<compile_context>
chip_gen: v7x
topology: tpu7x:2x2x1
jax: 0.10.0
libtpu: 0.0.40
codegen_flags: <defaults>
</compile_context>

<pallas_src>
import numpy as np

import jax
import jax.numpy as jnp
from jax.experimental import pallas as pl
from jax.experimental.pallas import tpu as pltpu


def _round_up(v, m):
    return ((v + m - 1) // m) * m


# ----------------------------------------------------------------------------
# Trilinear interpolation taps / matrices (PyTorch trilinear, align_corners=False).
# NOTE: very old pytorch-deeplab-resnet code effectively used align_corners=True;
# flip the source-index formula below if that behavior is required.
# ----------------------------------------------------------------------------
def _interp_taps(out_size, in_size):
    """Static (python) 2-tap tables: indices i0/i1 and fractional weight per output."""
    i0s, i1s, frs = [], [], []
    scale = in_size / out_size
    for o in range(out_size):
        src = max((o + 0.5) * scale - 0.5, 0.0)
        i0 = min(int(np.floor(src)), in_size - 1)
        i1 = min(i0 + 1, in_size - 1)
        i0s.append(i0)
        i1s.append(i1)
        frs.append(float(src - i0))
    return i0s, i1s, frs


def _interp_matrix_T(out_size, in_size, dtype):
    """(in_size, out_size) interpolation matrix transpose (for right-multiplication)."""
    i0s, i1s, frs = _interp_taps(out_size, in_size)
    m = np.zeros((in_size, out_size), np.float32)
    for o in range(out_size):
        m[i0s[o], o] += 1.0 - frs[o]
        m[i1s[o], o] += frs[o]
    return jnp.asarray(m, dtype=dtype)


# ----------------------------------------------------------------------------
# Parameters for the stand-in Scale network.
# ----------------------------------------------------------------------------
def init_params(key, in_ch, hidden, num_classes):
    k1, k2, k3, k4 = jax.random.split(key, 4)
    patch = in_ch * 8                                 # 2*2*2 patch
    w1 = jax.random.normal(k1, (patch, hidden), jnp.float32) / jnp.sqrt(patch)
    b1 = 0.01 * jax.random.normal(k2, (hidden,), jnp.float32)
    w2 = jax.random.normal(k3, (hidden, num_classes), jnp.float32) / jnp.sqrt(hidden)
    b2 = 0.01 * jax.random.normal(k4, (num_classes,), jnp.float32)
    return {"w1": w1, "b1": b1, "w2": w2, "b2": b2}


def _patchify(x):
    """x (N,C,D,H,W) -> (N, 8C, d*h*w) patch matrix (channels first = sublanes)."""
    N, C, D, H, W = x.shape
    Dp, Hp, Wp = _round_up(D, 2), _round_up(H, 2), _round_up(W, 2)
    if (Dp, Hp, Wp) != (D, H, W):                     # pad odd spatial dims (stand-in stem)
        x = jnp.pad(x, ((0, 0), (0, 0), (0, Dp - D), (0, Hp - H), (0, Wp - W)))
    d, h, w = Dp // 2, Hp // 2, Wp // 2
    xp = x.reshape(N, C, d, 2, h, 2, w, 2)
    xp = jnp.transpose(xp, (0, 1, 3, 5, 7, 2, 4, 6))  # (N, C,2,2,2, d,h,w) — im2col glue
    return xp.reshape(N, 8 * C, d * h * w), (d, h, w)


# ----------------------------------------------------------------------------
# Kernel 1: fused Scale network (stem conv + ReLU + classifier), transposed
# layout: channels on sublanes, voxels on lanes.  bf16 MXU, f32 accumulation.
# ----------------------------------------------------------------------------
def _scale_kernel(a_ref, w1t_ref, b1_ref, w2t_ref, b2_ref, o_ref):
    a = a_ref[0]                                                       # (8C, TM) bf16
    feat = jnp.dot(w1t_ref[...], a, preferred_element_type=jnp.float32)
    feat = jnp.maximum(feat + b1_ref[...], 0.0)                        # (hidden, TM) f32, VMEM only
    feat = feat.astype(jnp.bfloat16)
    logits = jnp.dot(w2t_ref[...], feat, preferred_element_type=jnp.float32)
    o_ref[0] = (logits + b2_ref[...]).astype(o_ref.dtype)              # (K, TM) bf16, lane-dense


def scale_forward(params, x):
    """Fused stem + classifier.  Returns coarse logits (N, K, d*h*w) bf16 and (d,h,w)."""
    a, (d, h, w) = _patchify(x)
    a = a.astype(jnp.bfloat16)            # bf16 patch matrix: halves the im2col HBM round trip
    N, P, vox = a.shape
    hidden = params["w1"].shape[1]
    K = params["w2"].shape[1]
    assert params["w1"].shape[0] == P

    # Large lane-dense voxel tile (review: per-step overhead dominates at TM=512).
    TM = min(2048, _round_up(vox, 128))
    vox_p = _round_up(vox, TM)
    if vox_p != vox:                      # demo path: TM divides vox, no pad/slice pass
        a = jnp.pad(a, ((0, 0), (0, 0), (0, vox_p - vox)))

    w1t = params["w1"].T.astype(jnp.bfloat16)          # (hidden, 8C)
    b1 = params["b1"].reshape(hidden, 1)               # f32
    w2t = params["w2"].T.astype(jnp.bfloat16)          # (K, hidden)
    b2 = params["b2"].reshape(K, 1)                    # f32

    out = pl.pallas_call(
        _scale_kernel,
        out_shape=jax.ShapeDtypeStruct((N, K, vox_p), jnp.bfloat16),
        grid=(N, vox_p // TM),
        in_specs=[
            pl.BlockSpec((1, P, TM), lambda n, t: (n, 0, t)),
            pl.BlockSpec((hidden, P), lambda n, t: (0, 0)),
            pl.BlockSpec((hidden, 1), lambda n, t: (0, 0)),
            pl.BlockSpec((K, hidden), lambda n, t: (0, 0)),
            pl.BlockSpec((K, 1), lambda n, t: (0, 0)),
        ],
        out_specs=pl.BlockSpec((1, K, TM), lambda n, t: (n, 0, t)),
        compiler_params=pltpu.CompilerParams(
            dimension_semantics=("parallel", "parallel"),
            vmem_limit_bytes=32 * 1024 * 1024),
    )(a, w1t, b1, w2t, b2)
    if vox_p != vox:
        out = out[:, :, :vox]             # drop padded-tail garbage logits before upsampling
    return out, (d, h, w)


# ----------------------------------------------------------------------------
# Kernel 2: trilinear upsample, separable.
#   H-interp (small matmul) -> W-interp (small matmul) -> D-interp (2-tap lerp, VPU)
# per group of G (n,k) slabs; coarse read once, output written once in final order.
# ----------------------------------------------------------------------------
def trilinear_upsample(coarse, coarse_dhw, out_dhw):
    """coarse (N, K, d*h*w) bf16 -> (N, K, D, H, W) f32."""
    N, K, vox = coarse.shape
    d, h, w = coarse_dhw
    D, H, W = out_dhw
    assert vox == d * h * w
    NK = N * K

    y4 = coarse.reshape(NK, d, h, w)                       # free view (d-major, w-minor)
    mhT = _interp_matrix_T(H, h, jnp.bfloat16)             # (h, H)
    mwT = _interp_matrix_T(W, w, jnp.bfloat16)             # (w, W)
    i0s, i1s, frs = _interp_taps(D, d)                     # static 2-tap D tables

    # G (n,k) slabs per grid step: fills the MXU M dimension and cuts grid steps,
    # bounded by a VMEM budget for the double-buffered output block.
    out_block_bytes = D * H * W * 4
    gmax = max(1, (8 * 1024 * 1024) // (2 * out_block_bytes))
    G = 1
    for cand in (16, 8, 4, 2):
        if cand <= gmax and NK % cand == 0 and NK // cand >= 2:
            G = cand
            break
    gd = G * d
    # TODO(synk): for very large D*H*W, additionally tile the output D/HW axes.

    def _upsample_kernel(y_ref, mhT_ref, mwT_ref, o_ref):
        # y_ref: (G, d, h, w) bf16 ; o_ref: (G, D, H, W) f32
        t = y_ref[...].astype(jnp.float32)                 # (G, d, h, w)
        # ---- H interpolation (contract h): one dot, M = G*d*w ----
        t = t.reshape(gd, h, w)
        t = jnp.swapaxes(t, 1, 2)                          # (G*d, w, h)  minor-dim swap (XLU)
        t = t.reshape(gd * w, h).astype(jnp.bfloat16)
        t = jnp.dot(t, mhT_ref[...], preferred_element_type=jnp.float32)   # (G*d*w, H)
        # ---- W interpolation (contract w): one dot, M = G*d*H ----
        t = t.reshape(gd, w, H)
        t = jnp.swapaxes(t, 1, 2)                          # (G*d, H, w)
        t = t.reshape(gd * H, w).astype(jnp.bfloat16)
        t = jnp.dot(t, mwT_ref[...], preferred_element_type=jnp.float32)   # (G*d*H, W)
        t = t.reshape(G, d, H, W)                          # leading split only
        # ---- D interpolation: static 2-tap lerp over a leading (untiled) axis ----
        for z in range(D):
            val = (1.0 - frs[z]) * t[:, i0s[z]] + frs[z] * t[:, i1s[z]]    # (G, H, W)
            o_ref[:, z, :, :] = val.astype(o_ref.dtype)

    out = pl.pallas_call(
        _upsample_kernel,
        out_shape=jax.ShapeDtypeStruct((NK, D, H, W), jnp.float32),
        grid=(NK // G,),
        in_specs=[
            pl.BlockSpec((G, d, h, w), lambda g: (g, 0, 0, 0)),
            pl.BlockSpec((h, H), lambda g: (0, 0)),
            pl.BlockSpec((w, W), lambda g: (0, 0)),
        ],
        out_specs=pl.BlockSpec((G, D, H, W), lambda g: (g, 0, 0, 0)),
        compiler_params=pltpu.CompilerParams(
            dimension_semantics=("parallel",),
            vmem_limit_bytes=32 * 1024 * 1024),
    )(y4, mhT, mwT)
    return out.reshape(N, K, D, H, W)                      # free: already in final order


def ms_deeplab_forward(params, x):
    D, H, W = x.shape[2], x.shape[3], x.shape[4]
    coarse, dhw = scale_forward(params, x)
    return trilinear_upsample(coarse, dhw, (D, H, W))


# ----------------------------------------------------------------------------
# Pure-jnp reference (mirrors the bf16 casts of the Pallas path) — correctness check.
# ----------------------------------------------------------------------------
def _reference_forward(params, x):
    N = x.shape[0]
    D, H, W = x.shape[2], x.shape[3], x.shape[4]
    a, (d, h, w) = _patchify(x)
    a = a.astype(jnp.bfloat16)
    w1t = params["w1"].T.astype(jnp.bfloat16)
    w2t = params["w2"].T.astype(jnp.bfloat16)
    K = w2t.shape[0]

    feat = jnp.einsum("hp,npv->nhv", w1t, a, preferred_element_type=jnp.float32)
    feat = jnp.maximum(feat + params["b1"][None, :, None], 0.0).astype(jnp.bfloat16)
    logits = jnp.einsum("kh,nhv->nkv", w2t, feat, preferred_element_type=jnp.float32)
    coarse = (logits + params["b2"][None, :, None]).astype(jnp.bfloat16)

    cb = coarse.reshape(N, K, d, h, w)
    mhT = _interp_matrix_T(H, h, jnp.bfloat16)
    mwT = _interp_matrix_T(W, w, jnp.bfloat16)
    tH = jnp.einsum("nkdhw,hH->nkdHw", cb, mhT,
                    preferred_element_type=jnp.float32).astype(jnp.bfloat16)
    tW = jnp.einsum("nkdHw,wW->nkdHW", tH, mwT, preferred_element_type=jnp.float32)
    i0s, i1s, frs = _interp_taps(D, d)
    rows = [(1.0 - frs[z]) * tW[:, :, i0s[z]] + frs[z] * tW[:, :, i1s[z]]
            for z in range(D)]
    return jnp.stack(rows, axis=2)                         # (N, K, D, H, W)


if __name__ == "__main__":
    key = jax.random.PRNGKey(0)
    kx, kp = jax.random.split(key)

    # small 5D input consistent with the module: (N, C, D, H, W)
    N, C, D, H, W = 2, 3, 8, 16, 16
    num_classes, hidden = 4, 32
    x = jax.random.normal(kx, (N, C, D, H, W), jnp.float32)
    params = init_params(kp, C, hidden, num_classes)

    out = jax.block_until_ready(jax.jit(ms_deeplab_forward)(params, x))

    assert out.shape == (N, num_classes, D, H, W), out.shape
    assert out.dtype == jnp.float32
    assert bool(jnp.all(jnp.isfinite(out)))

    ref = jax.block_until_ready(jax.jit(_reference_forward)(params, x))
    # bf16 MXU operands on both paths -> agreement up to bf16 rounding.
    assert bool(jnp.allclose(out, ref, atol=1e-1, rtol=5e-2)), \
        float(jnp.max(jnp.abs(out - ref)))

    print("KERNEL_OK")
</pallas_src>

<mosaic_0001>
module attributes {stable_mosaic.version = 11 : i64} {
  func.func @_scale_kernel(%arg0: i32, %arg1: i32, %arg2: memref<1x24x256xbf16, #tpu.memory_space<vmem>>, %arg3: memref<32x24xbf16, #tpu.memory_space<vmem>>, %arg4: memref<32x1xf32, #tpu.memory_space<vmem>>, %arg5: memref<4x32xbf16, #tpu.memory_space<vmem>>, %arg6: memref<4x1xf32, #tpu.memory_space<vmem>>, %arg7: memref<1x4x256xbf16, #tpu.memory_space<vmem>>) attributes {dimension_semantics = [#tpu.dimension_semantics<parallel>, #tpu.dimension_semantics<parallel>], iteration_bounds = array<i64: 2, 1>, scalar_prefetch = 0 : i64, scratch_operands = 0 : i64, tpu.core_type = #tpu.core_type<tc>, window_params = [{transform_indices = @transform_0, window_bounds = array<i64: 1, 24, 256>}, {pipeline_mode = #tpu.pipeline_mode<synchronous>, transform_indices = @transform_1, window_bounds = array<i64: 32, 24>}, {pipeline_mode = #tpu.pipeline_mode<synchronous>, transform_indices = @transform_2, window_bounds = array<i64: 32, 1>}, {pipeline_mode = #tpu.pipeline_mode<synchronous>, transform_indices = @transform_3, window_bounds = array<i64: 4, 32>}, {pipeline_mode = #tpu.pipeline_mode<synchronous>, transform_indices = @transform_4, window_bounds = array<i64: 4, 1>}, {transform_indices = @transform_5, window_bounds = array<i64: 1, 4, 256>}]} {
    %c0 = arith.constant 0 : index
    %c0_0 = arith.constant 0 : index
    %c0_1 = arith.constant 0 : index
    %0 = vector.load %arg2[%c0, %c0_0, %c0_1] : memref<1x24x256xbf16, #tpu.memory_space<vmem>>, vector<1x24x256xbf16>
    %1 = vector.shape_cast %0 : vector<1x24x256xbf16> to vector<24x256xbf16>
    %c0_2 = arith.constant 0 : index
    %c0_3 = arith.constant 0 : index
    %2 = vector.load %arg3[%c0_2, %c0_3] : memref<32x24xbf16, #tpu.memory_space<vmem>>, vector<32x24xbf16>
    %cst = arith.constant dense<0.000000e+00> : vector<32x256xf32>
    %3 = tpu.matmul %2, %1, %cst {dimension_numbers = #tpu.dot_dimension_numbers<[1], [0], [0], [1], [0, 0, 1, 1], [], []>} : vector<32x24xbf16>, vector<24x256xbf16>, vector<32x256xf32> -> vector<32x256xf32>
    %c0_4 = arith.constant 0 : index
    %c0_5 = arith.constant 0 : index
    %4 = vector.load %arg4[%c0_4, %c0_5] : memref<32x1xf32, #tpu.memory_space<vmem>>, vector<32x1xf32>
    %5 = vector.broadcast %4 : vector<32x1xf32> to vector<32x256xf32>
    %6 = arith.addf %3, %5 : vector<32x256xf32>
    %cst_6 = arith.constant 0.000000e+00 : f32
    %7 = vector.broadcast %cst_6 : f32 to vector<32x256xf32>
    %8 = arith.maximumf %6, %7 : vector<32x256xf32>
    %9 = arith.truncf %8 : vector<32x256xf32> to vector<32x256xbf16>
    %c0_7 = arith.constant 0 : index
    %c0_8 = arith.constant 0 : index
    %10 = vector.load %arg5[%c0_7, %c0_8] : memref<4x32xbf16, #tpu.memory_space<vmem>>, vector<4x32xbf16>
    %cst_9 = arith.constant dense<0.000000e+00> : vector<4x256xf32>
    %11 = tpu.matmul %10, %9, %cst_9 {dimension_numbers = #tpu.dot_dimension_numbers<[1], [0], [0], [1], [0, 0, 1, 1], [], []>} : vector<4x32xbf16>, vector<32x256xbf16>, vector<4x256xf32> -> vector<4x256xf32>
    %c0_10 = arith.constant 0 : index
    %c0_11 = arith.constant 0 : index
    %12 = vector.load %arg6[%c0_10, %c0_11] : memref<4x1xf32, #tpu.memory_space<vmem>>, vector<4x1xf32>
    %13 = vector.broadcast %12 : vector<4x1xf32> to vector<4x256xf32>
    %14 = arith.addf %11, %13 : vector<4x256xf32>
    %15 = arith.truncf %14 : vector<4x256xf32> to vector<4x256xbf16>
    %c0_12 = arith.constant 0 : index
    %c0_13 = arith.constant 0 : index
    %c0_14 = arith.constant 0 : index
    %16 = vector.load %arg7[%c0_12, %c0_13, %c0_14] : memref<1x4x256xbf16, #tpu.memory_space<vmem>>, vector<1x4x256xbf16>
    %17 = vector.shape_cast %16 : vector<1x4x256xbf16> to vector<4x256xbf16>
    %18 = vector.shape_cast %15 : vector<4x256xbf16> to vector<1x4x256xbf16>
    tpu.vector_store %arg7[%c0_12, %c0_13, %c0_14], %18 {strides = array<i32>} : memref<1x4x256xbf16, #tpu.memory_space<vmem>>, vector<1x4x256xbf16>,
    return
  }
  func.func @transform_0(%arg0: i32, %arg1: i32) -> (i32, i32, i32) {
    %c0_i32 = arith.constant 0 : i32
    %c0_i32_0 = arith.constant 0 : i32
    return %arg0, %c0_i32, %arg1 : i32, i32, i32
  }
  func.func @transform_1(%arg0: i32, %arg1: i32) -> (i32, i32) {
    %c0_i32 = arith.constant 0 : i32
    %c0_i32_0 = arith.constant 0 : i32
    %c0_i32_1 = arith.constant 0 : i32
    return %c0_i32, %c0_i32_0 : i32, i32
  }
  func.func @transform_2(%arg0: i32, %arg1: i32) -> (i32, i32) {
    %c0_i32 = arith.constant 0 : i32
    %c0_i32_0 = arith.constant 0 : i32
    %c0_i32_1 = arith.constant 0 : i32
    return %c0_i32, %c0_i32_0 : i32, i32
  }
  func.func @transform_3(%arg0: i32, %arg1: i32) -> (i32, i32) {
    %c0_i32 = arith.constant 0 : i32
    %c0_i32_0 = arith.constant 0 : i32
    %c0_i32_1 = arith.constant 0 : i32
    return %c0_i32, %c0_i32_0 : i32, i32
  }
  func.func @transform_4(%arg0: i32, %arg1: i32) -> (i32, i32) {
    %c0_i32 = arith.constant 0 : i32
    %c0_i32_0 = arith.constant 0 : i32
    %c0_i32_1 = arith.constant 0 : i32
    return %c0_i32, %c0_i32_0 : i32, i32
  }
  func.func @transform_5(%arg0: i32, %arg1: i32) -> (i32, i32, i32) {
    %c0_i32 = arith.constant 0 : i32
    %c0_i32_0 = arith.constant 0 : i32
    return %arg0, %c0_i32, %arg1 : i32, i32, i32
  }
}

module attributes {stable_mosaic.version = 11 : i64} {
  func.func @_upsample_kernel(%arg0: i32, %arg1: memref<4x4x8x8xbf16, #tpu.memory_space<vmem>>, %arg2: memref<8x16xbf16, #tpu.memory_space<vmem>>, %arg3: memref<8x16xbf16, #tpu.memory_space<vmem>>, %arg4: memref<4x8x16x16xf32, #tpu.memory_space<vmem>>) attributes {dimension_semantics = [#tpu.dimension_semantics<parallel>], iteration_bounds = array<i64: 2>, scalar_prefetch = 0 : i64, scratch_operands = 0 : i64, tpu.core_type = #tpu.core_type<tc>, window_params = [{transform_indices = @transform_0, window_bounds = array<i64: 4, 4, 8, 8>}, {pipeline_mode = #tpu.pipeline_mode<synchronous>, transform_indices = @transform_1, window_bounds = array<i64: 8, 16>}, {pipeline_mode = #tpu.pipeline_mode<synchronous>, transform_indices = @transform_2, window_bounds = array<i64: 8, 16>}, {transform_indices = @transform_3, window_bounds = array<i64: 4, 8, 16, 16>}]} {
    %c0 = arith.constant 0 : index
    %c0_0 = arith.constant 0 : index
    %c0_1 = arith.constant 0 : index
    %c0_2 = arith.constant 0 : index
    %0 = vector.load %arg1[%c0, %c0_0, %c0_1, %c0_2] : memref<4x4x8x8xbf16, #tpu.memory_space<vmem>>, vector<4x4x8x8xbf16>
    %1 = arith.extf %0 : vector<4x4x8x8xbf16> to vector<4x4x8x8xf32>
    %2 = vector.shape_cast %1 : vector<4x4x8x8xf32> to vector<16x8x8xf32>
    %3 = tpu.transpose %2, [0, 2, 1] : vector<16x8x8xf32> -> vector<16x8x8xf32>
    %4 = vector.shape_cast %3 : vector<16x8x8xf32> to vector<128x8xf32>
    %5 = arith.truncf %4 : vector<128x8xf32> to vector<128x8xbf16>
    %c0_3 = arith.constant 0 : index
    %c0_4 = arith.constant 0 : index
    %6 = vector.load %arg2[%c0_3, %c0_4] : memref<8x16xbf16, #tpu.memory_space<vmem>>, vector<8x16xbf16>
    %cst = arith.constant dense<0.000000e+00> : vector<128x16xf32>
    %7 = tpu.matmul %5, %6, %cst {dimension_numbers = #tpu.dot_dimension_numbers<[1], [0], [0], [1], [0, 0, 1, 1], [], []>} : vector<128x8xbf16>, vector<8x16xbf16>, vector<128x16xf32> -> vector<128x16xf32>
    %8 = vector.shape_cast %7 : vector<128x16xf32> to vector<16x8x16xf32>
    %9 = tpu.transpose %8, [0, 2, 1] : vector<16x8x16xf32> -> vector<16x16x8xf32>
    %10 = vector.shape_cast %9 : vector<16x16x8xf32> to vector<256x8xf32>
    %11 = arith.truncf %10 : vector<256x8xf32> to vector<256x8xbf16>
    %c0_5 = arith.constant 0 : index
    %c0_6 = arith.constant 0 : index
    %12 = vector.load %arg3[%c0_5, %c0_6] : memref<8x16xbf16, #tpu.memory_space<vmem>>, vector<8x16xbf16>
    %cst_7 = arith.constant dense<0.000000e+00> : vector<256x16xf32>
    %13 = tpu.matmul %11, %12, %cst_7 {dimension_numbers = #tpu.dot_dimension_numbers<[1], [0], [0], [1], [0, 0, 1, 1], [], []>} : vector<256x8xbf16>, vector<8x16xbf16>, vector<256x16xf32> -> vector<256x16xf32>
    %14 = vector.shape_cast %13 : vector<256x16xf32> to vector<4x4x16x16xf32>
    %15 = vector.extract_strided_slice %14 {offsets = [0, 0, 0, 0], sizes = [4, 1, 16, 16], strides = [1, 1, 1, 1]} : vector<4x4x16x16xf32> to vector<4x1x16x16xf32>
    %16 = vector.shape_cast %15 : vector<4x1x16x16xf32> to vector<4x16x16xf32>
    %cst_8 = arith.constant 1.000000e+00 : f32
    %17 = vector.broadcast %cst_8 : f32 to vector<4x16x16xf32>
    %18 = arith.mulf %17, %16 : vector<4x16x16xf32>
    %19 = vector.extract_strided_slice %14 {offsets = [0, 1, 0, 0], sizes = [4, 1, 16, 16], strides = [1, 1, 1, 1]} : vector<4x4x16x16xf32> to vector<4x1x16x16xf32>
    %20 = vector.shape_cast %19 : vector<4x1x16x16xf32> to vector<4x16x16xf32>
    %cst_9 = arith.constant 0.000000e+00 : f32
    %21 = vector.broadcast %cst_9 : f32 to vector<4x16x16xf32>
    %22 = arith.mulf %21, %20 : vector<4x16x16xf32>
    %23 = arith.addf %18, %22 : vector<4x16x16xf32>
    %c0_10 = arith.constant 0 : index
    %c0_11 = arith.constant 0 : index
    %c0_12 = arith.constant 0 : index
    %c0_13 = arith.constant 0 : index
    %24 = vector.load %arg4[%c0_10, %c0_11, %c0_12, %c0_13] : memref<4x8x16x16xf32, #tpu.memory_space<vmem>>, vector<4x1x16x16xf32>
    %25 = vector.shape_cast %24 : vector<4x1x16x16xf32> to vector<4x16x16xf32>
    %26 = vector.shape_cast %23 : vector<4x16x16xf32> to vector<4x1x16x16xf32>
    tpu.vector_store %arg4[%c0_10, %c0_11, %c0_12, %c0_13], %26 {strides = array<i32>} : memref<4x8x16x16xf32, #tpu.memory_space<vmem>>, vector<4x1x16x16xf32>,
    %27 = vector.extract_strided_slice %14 {offsets = [0, 0, 0, 0], sizes = [4, 1, 16, 16], strides = [1, 1, 1, 1]} : vector<4x4x16x16xf32> to vector<4x1x16x16xf32>
    %28 = vector.shape_cast %27 : vector<4x1x16x16xf32> to vector<4x16x16xf32>
    %cst_14 = arith.constant 7.500000e-01 : f32
    %29 = vector.broadcast %cst_14 : f32 to vector<4x16x16xf32>
    %30 = arith.mulf %29, %28 : vector<4x16x16xf32>
    %31 = vector.extract_strided_slice %14 {offsets = [0, 1, 0, 0], sizes = [4, 1, 16, 16], strides = [1, 1, 1, 1]} : vector<4x4x16x16xf32> to vector<4x1x16x16xf32>
    %32 = vector.shape_cast %31 : vector<4x1x16x16xf32> to vector<4x16x16xf32>
    %cst_15 = arith.constant 2.500000e-01 : f32
    %33 = vector.broadcast %cst_15 : f32 to vector<4x16x16xf32>
    %34 = arith.mulf %33, %32 : vector<4x16x16xf32>
    %35 = arith.addf %30, %34 : vector<4x16x16xf32>
    %c0_16 = arith.constant 0 : index
    %c1 = arith.constant 1 : index
    %c0_17 = arith.constant 0 : index
    %c0_18 = arith.constant 0 : index
    %36 = vector.load %arg4[%c0_16, %c1, %c0_17, %c0_18] : memref<4x8x16x16xf32, #tpu.memory_space<vmem>>, vector<4x1x16x16xf32>
    %37 = vector.shape_cast %36 : vector<4x1x16x16xf32> to vector<4x16x16xf32>
    %38 = vector.shape_cast %35 : vector<4x16x16xf32> to vector<4x1x16x16xf32>
    tpu.vector_store %arg4[%c0_16, %c1, %c0_17, %c0_18], %38 {strides = array<i32>} : memref<4x8x16x16xf32, #tpu.memory_space<vmem>>, vector<4x1x16x16xf32>,
    %39 = vector.extract_strided_slice %14 {offsets = [0, 0, 0, 0], sizes = [4, 1, 16, 16], strides = [1, 1, 1, 1]} : vector<4x4x16x16xf32> to vector<4x1x16x16xf32>
    %40 = vector.shape_cast %39 : vector<4x1x16x16xf32> to vector<4x16x16xf32>
    %cst_19 = arith.constant 2.500000e-01 : f32
    %41 = vector.broadcast %cst_19 : f32 to vector<4x16x16xf32>
    %42 = arith.mulf %41, %40 : vector<4x16x16xf32>
    %43 = vector.extract_strided_slice %14 {offsets = [0, 1, 0, 0], sizes = [4, 1, 16, 16], strides = [1, 1, 1, 1]} : vector<4x4x16x16xf32> to vector<4x1x16x16xf32>
    %44 = vector.shape_cast %43 : vector<4x1x16x16xf32> to vector<4x16x16xf32>
    %cst_20 = arith.constant 7.500000e-01 : f32
    %45 = vector.broadcast %cst_20 : f32 to vector<4x16x16xf32>
    %46 = arith.mulf %45, %44 : vector<4x16x16xf32>
    %47 = arith.addf %42, %46 : vector<4x16x16xf32>
    %c0_21 = arith.constant 0 : index
    %c2 = arith.constant 2 : index
    %c0_22 = arith.constant 0 : index
    %c0_23 = arith.constant 0 : index
    %48 = vector.load %arg4[%c0_21, %c2, %c0_22, %c0_23] : memref<4x8x16x16xf32, #tpu.memory_space<vmem>>, vector<4x1x16x16xf32>
    %49 = vector.shape_cast %48 : vector<4x1x16x16xf32> to vector<4x16x16xf32>
    %50 = vector.shape_cast %47 : vector<4x16x16xf32> to vector<4x1x16x16xf32>
    tpu.vector_store %arg4[%c0_21, %c2, %c0_22, %c0_23], %50 {strides = array<i32>} : memref<4x8x16x16xf32, #tpu.memory_space<vmem>>, vector<4x1x16x16xf32>,
    %51 = vector.extract_strided_slice %14 {offsets = [0, 1, 0, 0], sizes = [4, 1, 16, 16], strides = [1, 1, 1, 1]} : vector<4x4x16x16xf32> to vector<4x1x16x16xf32>
    %52 = vector.shape_cast %51 : vector<4x1x16x16xf32> to vector<4x16x16xf32>
    %cst_24 = arith.constant 7.500000e-01 : f32
    %53 = vector.broadcast %cst_24 : f32 to vector<4x16x16xf32>
    %54 = arith.mulf %53, %52 : vector<4x16x16xf32>
    %55 = vector.extract_strided_slice %14 {offsets = [0, 2, 0, 0], sizes = [4, 1, 16, 16], strides = [1, 1, 1, 1]} : vector<4x4x16x16xf32> to vector<4x1x16x16xf32>
    %56 = vector.shape_cast %55 : vector<4x1x16x16xf32> to vector<4x16x16xf32>
    %cst_25 = arith.constant 2.500000e-01 : f32
    %57 = vector.broadcast %cst_25 : f32 to vector<4x16x16xf32>
    %58 = arith.mulf %57, %56 : vector<4x16x16xf32>
    %59 = arith.addf %54, %58 : vector<4x16x16xf32>
    %c0_26 = arith.constant 0 : index
    %c3 = arith.constant 3 : index
    %c0_27 = arith.constant 0 : index
    %c0_28 = arith.constant 0 : index
    %60 = vector.load %arg4[%c0_26, %c3, %c0_27, %c0_28] : memref<4x8x16x16xf32, #tpu.memory_space<vmem>>, vector<4x1x16x16xf32>
    %61 = vector.shape_cast %60 : vector<4x1x16x16xf32> to vector<4x16x16xf32>
    %62 = vector.shape_cast %59 : vector<4x16x16xf32> to vector<4x1x16x16xf32>
    tpu.vector_store %arg4[%c0_26, %c3, %c0_27, %c0_28], %62 {strides = array<i32>} : memref<4x8x16x16xf32, #tpu.memory_space<vmem>>, vector<4x1x16x16xf32>,
    %63 = vector.extract_strided_slice %14 {offsets = [0, 1, 0, 0], sizes = [4, 1, 16, 16], strides = [1, 1, 1, 1]} : vector<4x4x16x16xf32> to vector<4x1x16x16xf32>
    %64 = vector.shape_cast %63 : vector<4x1x16x16xf32> to vector<4x16x16xf32>
    %cst_29 = arith.constant 2.500000e-01 : f32
    %65 = vector.broadcast %cst_29 : f32 to vector<4x16x16xf32>
    %66 = arith.mulf %65, %64 : vector<4x16x16xf32>
    %67 = vector.extract_strided_slice %14 {offsets = [0, 2, 0, 0], sizes = [4, 1, 16, 16], strides = [1, 1, 1, 1]} : vector<4x4x16x16xf32> to vector<4x1x16x16xf32>
    %68 = vector.shape_cast %67 : vector<4x1x16x16xf32> to vector<4x16x16xf32>
    %cst_30 = arith.constant 7.500000e-01 : f32
    %69 = vector.broadcast %cst_30 : f32 to vector<4x16x16xf32>
    %70 = arith.mulf %69, %68 : vector<4x16x16xf32>
    %71 = arith.addf %66, %70 : vector<4x16x16xf32>
    %c0_31 = arith.constant 0 : index
    %c4 = arith.constant 4 : index
    %c0_32 = arith.constant 0 : index
    %c0_33 = arith.constant 0 : index
    %72 = vector.load %arg4[%c0_31, %c4, %c0_32, %c0_33] : memref<4x8x16x16xf32, #tpu.memory_space<vmem>>, vector<4x1x16x16xf32>
    %73 = vector.shape_cast %72 : vector<4x1x16x16xf32> to vector<4x16x16xf32>
    %74 = vector.shape_cast %71 : vector<4x16x16xf32> to vector<4x1x16x16xf32>
    tpu.vector_store %arg4[%c0_31, %c4, %c0_32, %c0_33], %74 {strides = array<i32>} : memref<4x8x16x16xf32, #tpu.memory_space<vmem>>, vector<4x1x16x16xf32>,
    %75 = vector.extract_strided_slice %14 {offsets = [0, 2, 0, 0], sizes = [4, 1, 16, 16], strides = [1, 1, 1, 1]} : vector<4x4x16x16xf32> to vector<4x1x16x16xf32>
    %76 = vector.shape_cast %75 : vector<4x1x16x16xf32> to vector<4x16x16xf32>
    %cst_34 = arith.constant 7.500000e-01 : f32
    %77 = vector.broadcast %cst_34 : f32 to vector<4x16x16xf32>
    %78 = arith.mulf %77, %76 : vector<4x16x16xf32>
    %79 = vector.extract_strided_slice %14 {offsets = [0, 3, 0, 0], sizes = [4, 1, 16, 16], strides = [1, 1, 1, 1]} : vector<4x4x16x16xf32> to vector<4x1x16x16xf32>
    %80 = vector.shape_cast %79 : vector<4x1x16x16xf32> to vector<4x16x16xf32>
    %cst_35 = arith.constant 2.500000e-01 : f32
    %81 = vector.broadcast %cst_35 : f32 to vector<4x16x16xf32>
    %82 = arith.mulf %81, %80 : vector<4x16x16xf32>
    %83 = arith.addf %78, %82 : vector<4x16x16xf32>
    %c0_36 = arith.constant 0 : index
    %c5 = arith.constant 5 : index
    %c0_37 = arith.constant 0 : index
    %c0_38 = arith.constant 0 : index
    %84 = vector.load %arg4[%c0_36, %c5, %c0_37, %c0_38] : memref<4x8x16x16xf32, #tpu.memory_space<vmem>>, vector<4x1x16x16xf32>
    %85 = vector.shape_cast %84 : vector<4x1x16x16xf32> to vector<4x16x16xf32>
    %86 = vector.shape_cast %83 : vector<4x16x16xf32> to vector<4x1x16x16xf32>
    tpu.vector_store %arg4[%c0_36, %c5, %c0_37, %c0_38], %86 {strides = array<i32>} : memref<4x8x16x16xf32, #tpu.memory_space<vmem>>, vector<4x1x16x16xf32>,
    %87 = vector.extract_strided_slice %14 {offsets = [0, 2, 0, 0], sizes = [4, 1, 16, 16], strides = [1, 1, 1, 1]} : vector<4x4x16x16xf32> to vector<4x1x16x16xf32>
    %88 = vector.shape_cast %87 : vector<4x1x16x16xf32> to vector<4x16x16xf32>
    %cst_39 = arith.constant 2.500000e-01 : f32
    %89 = vector.broadcast %cst_39 : f32 to vector<4x16x16xf32>
    %90 = arith.mulf %89, %88 : vector<4x16x16xf32>
    %91 = vector.extract_strided_slice %14 {offsets = [0, 3, 0, 0], sizes = [4, 1, 16, 16], strides = [1, 1, 1, 1]} : vector<4x4x16x16xf32> to vector<4x1x16x16xf32>
    %92 = vector.shape_cast %91 : vector<4x1x16x16xf32> to vector<4x16x16xf32>
    %cst_40 = arith.constant 7.500000e-01 : f32
    %93 = vector.broadcast %cst_40 : f32 to vector<4x16x16xf32>
    %94 = arith.mulf %93, %92 : vector<4x16x16xf32>
    %95 = arith.addf %90, %94 : vector<4x16x16xf32>
    %c0_41 = arith.constant 0 : index
    %c6 = arith.constant 6 : index
    %c0_42 = arith.constant 0 : index
    %c0_43 = arith.constant 0 : index
    %96 = vector.load %arg4[%c0_41, %c6, %c0_42, %c0_43] : memref<4x8x16x16xf32, #tpu.memory_space<vmem>>, vector<4x1x16x16xf32>
    %97 = vector.shape_cast %96 : vector<4x1x16x16xf32> to vector<4x16x16xf32>
    %98 = vector.shape_cast %95 : vector<4x16x16xf32> to vector<4x1x16x16xf32>
    tpu.vector_store %arg4[%c0_41, %c6, %c0_42, %c0_43], %98 {strides = array<i32>} : memref<4x8x16x16xf32, #tpu.memory_space<vmem>>, vector<4x1x16x16xf32>,
    %99 = vector.extract_strided_slice %14 {offsets = [0, 3, 0, 0], sizes = [4, 1, 16, 16], strides = [1, 1, 1, 1]} : vector<4x4x16x16xf32> to vector<4x1x16x16xf32>
    %100 = vector.shape_cast %99 : vector<4x1x16x16xf32> to vector<4x16x16xf32>
    %cst_44 = arith.constant 7.500000e-01 : f32
    %101 = vector.broadcast %cst_44 : f32 to vector<4x16x16xf32>
    %102 = arith.mulf %101, %100 : vector<4x16x16xf32>
    %103 = vector.extract_strided_slice %14 {offsets = [0, 3, 0, 0], sizes = [4, 1, 16, 16], strides = [1, 1, 1, 1]} : vector<4x4x16x16xf32> to vector<4x1x16x16xf32>
    %104 = vector.shape_cast %103 : vector<4x1x16x16xf32> to vector<4x16x16xf32>
    %cst_45 = arith.constant 2.500000e-01 : f32
    %105 = vector.broadcast %cst_45 : f32 to vector<4x16x16xf32>
    %106 = arith.mulf %105, %104 : vector<4x16x16xf32>
    %107 = arith.addf %102, %106 : vector<4x16x16xf32>
    %c0_46 = arith.constant 0 : index
    %c7 = arith.constant 7 : index
    %c0_47 = arith.constant 0 : index
    %c0_48 = arith.constant 0 : index
    %108 = vector.load %arg4[%c0_46, %c7, %c0_47, %c0_48] : memref<4x8x16x16xf32, #tpu.memory_space<vmem>>, vector<4x1x16x16xf32>
    %109 = vector.shape_cast %108 : vector<4x1x16x16xf32> to vector<4x16x16xf32>
    %110 = vector.shape_cast %107 : vector<4x16x16xf32> to vector<4x1x16x16xf32>
    tpu.vector_store %arg4[%c0_46, %c7, %c0_47, %c0_48], %110 {strides = array<i32>} : memref<4x8x16x16xf32, #tpu.memory_space<vmem>>, vector<4x1x16x16xf32>,
    return
  }
  func.func @transform_0(%arg0: i32) -> (i32, i32, i32, i32) {
    %c0_i32 = arith.constant 0 : i32
    %c0_i32_0 = arith.constant 0 : i32
    %c0_i32_1 = arith.constant 0 : i32
    %c0_i32_2 = arith.constant 0 : i32
    return %arg0, %c0_i32, %c0_i32_0, %c0_i32_1 : i32, i32, i32, i32
  }
  func.func @transform_1(%arg0: i32) -> (i32, i32) {
    %c0_i32 = arith.constant 0 : i32
    %c0_i32_0 = arith.constant 0 : i32
    %c0_i32_1 = arith.constant 0 : i32
    return %c0_i32, %c0_i32_0 : i32, i32
  }
  func.func @transform_2(%arg0: i32) -> (i32, i32) {
    %c0_i32 = arith.constant 0 : i32
    %c0_i32_0 = arith.constant 0 : i32
    %c0_i32_1 = arith.constant 0 : i32
    return %c0_i32, %c0_i32_0 : i32, i32
  }
  func.func @transform_3(%arg0: i32) -> (i32, i32, i32, i32) {
    %c0_i32 = arith.constant 0 : i32
    %c0_i32_0 = arith.constant 0 : i32
    %c0_i32_1 = arith.constant 0 : i32
    %c0_i32_2 = arith.constant 0 : i32
    return %arg0, %c0_i32, %c0_i32_0, %c0_i32_1 : i32, i32, i32, i32
  }
}

</mosaic_0001>

<bundles_post_ra>
// kernel: ms_deeplab_forward.2
= control target key start
LH: loop header
LB: loop body
LE: loop exit
PB: predicated region body
PF: predicated region fallthrough
CT: control target
= control target key end

     0   :  { %s666_s18 = smov 0   ;;  %s668_s19 = smov 0   ;;  %s727_s0 = inlined_call_operand.vmem [shape: bf16[2,24,256], index: 0, kind: input, shape index: {}]   ;;  %s728_s1 = inlined_call_operand.vmem [shape: bf16[32,24], index: 1, kind: input, shape index: {}]   ;;  %s729_s2 = inlined_call_operand.vmem [shape: f32[32,1], index: 2, kind: input, shape index: {}]   ;;  %s730_s3 = inlined_call_operand.vmem [shape: bf16[4,32], index: 3, kind: input, shape index: {}]   ;;  %s731_s4 = inlined_call_operand.vmem [shape: f32[4,1], index: 4, kind: input, shape index: {}]   ;;  %s732_s5 = inlined_call_operand.vmem [shape: bf16[2,4,256], index: 5, kind: output, shape index: {}]  }
   0x1   :  { %s670_s20 = smov 0  }
   0x2 LB: > { %s27_s21 = sadd.s32 1, %s629_s19  ;;  %p557_p0 = scmp.ge.s32.totalorder %s633_s20, 1  ;;  %s633_s20 = sphi %s670_s20, %s15_s20   ;;  %s629_s19 = sphi %s668_s19, %s734_s19   ;;  %s625_s18 = sphi %s666_s18, %s733_s18  }
   0x3   : > { %p29_p1 = scmp.ge.s32.totalorder %s27_s21, 2  ;;  %p208_p2 = scmp.lt.s32.totalorder %s633_s20, 3 }
   0x5   : > { %s736_s21 = smov (%p29_p1, %s27_s21), 0  ;;  %p209_p3 = pnand %p557_p0, %p208_p2 }
   0x6   : > { %p245_p4 = scmp.lt.s32.totalorder (!%p209_p3), %s625_s18, 1  ;;  %v635_v0 = vmov (!%p209_p3), 0   ;;  %v272_v1 = vld [vmem:[%s729_s2] sm:$0xff] (!%p209_p3)  ;;  %v274_v2 = vld [vmem:[%s729_s2 + $0x10] sm:$0xff] (!%p209_p3)  ;;  %v273_v3 = vld [vmem:[%s729_s2 + $0x8] sm:$0xff] (!%p209_p3)  ;;  %vm328_vm0 = vcmask (!%p209_p3), 1043456  }
   0x7   : > { %212 = sbr.rel (%p209_p3) target bundleno = 478 (0x1de), region = 40  ;;  %367 = vmatprep.mubr.bf16.mxu0 (!%p209_p3), %v635_v0  ;;  %602 = vset.pattern.permute.xlu0 (!%p209_p3), %v635_v0  ;;  %v275_v4 = vld [vmem:[%s729_s2 + $0x18] sm:$0xff] (!%p209_p3)  ;;  %v401_v10 = vld [vmem:[%s731_s4] sm:$0xf] (!%p209_p3)  ;;  %vm321_vm1 = vcmask (!%p209_p3), 195584   ;;  %v610_v13 = vld [vmem:[%s728_s1 + $0x8] sm:$0xff] (!%p209_p3)  }
   0x8   : > { %603 = vset.pattern.permute.xlu1 (!%p209_p3), %v635_v0  ;;  %443 = vmatprep.mubr.bf16.mxu1 (!%p209_p3), %v635_v0  ;;  %v609_v12 = vld [vmem:[%s728_s1] sm:$0xff] (!%p209_p3)   ;;  %vm407_vm2 = vcmask (!%p209_p3), 261120  }
   0x9   : > { %278 = vperm.xlu0 (!%p209_p3), %602, %v272_v1   ;;  %288 = vperm.xlu1 (!%p209_p3), %603, %v274_v2   ;;  %v400_v46 = vld [vmem:[%s730_s3] sm:$0x3] (!%p209_p3) }
   0xd   : > { %283 = vperm.xlu0 (!%p209_p3), %602, %v273_v3   ;;  %293 = vperm.xlu1 (!%p209_p3), %603, %v275_v4  }
   0xe   : > { %s738_s18 = smov (!%p245_p4, %s625_s18), 1 }
   0xf   : > { %s576_s26 = smul.u32 24, %s738_s18  ;;  %s575_s17 = sshll.u32 %s738_s18, 2 }
  0x10   : > { %s262_s24 = scalar_lea.vmem %s732_s5, %s575_s17 }
  0x11   : > { %s252_s8 = scalar_lea.vmem %s727_s0, %s576_s26  ;;  %404 = vperm.xlu0 %602, %v401_v10  }
  0x12   : > { %v267_v5 = vld [vmem:[%s252_s8 + $0x10] sm:$0xff]  ;;  %v604_v6 = vld [vmem:[%s252_s8 + $0x4] ss:$8 sps:$4 sm:$0xff]   ;;  %v607_v8 = vld [vmem:[%s252_s8] ss:$8 sps:$4 sm:$0xff]  }
  0x13   : > { %v566_v7 = vcombine.high %v267_v5, %v267_v5  ;;  %v565_v9 = vcombine.low %v267_v5, %v267_v5  ;;  %335 = vmatprep.subr.bf16.mxu0 %v604_v6 }
  0x14   : > { %336 = vmatpush1.bf16.msra.mxu0 %v607_v8 }
  0x15   : > { %567 = vmatprep.subr.msk.bf16.mxu0 %vm328_vm0, %v566_v7  ;;  %v330_v11 = vsel %vm328_vm0, %v565_v9, 0 }
  0x18   : > { %338 = vmatpush1.bf16.msra.mxu0 %v330_v11 }
  0x1b   : > { %568 = vmatmul.mubr.msk.bf16.vlgmr.msra.gmra.mrb[0].mxu0 %vm321_vm1, %v609_v12 }
  0x1c   : > { %377 = vmatprep.mubr.bf16.mxu0 %v635_v0 }
  0x23   : > { %569 = vmatmul.mubr.msk.bf16.gmra.mrb[4].mxu0 %vm321_vm1, %v610_v13 }
  0x88   : > { %v279_v14 = vpop.permute.xlu0 %278  ;;  %v289_v23 = vpop.permute.xlu1 %288 }
  0x8c   : > { %v284_v18 = vpop.permute.xlu0 %283  ;;  %v294_v34 = vpop.permute.xlu1 %293 }
  0x90   : > { %v405_v47 = vpop.permute.xlu0 %404 }
  0xee   : > { %v369_v15 = vpop.f32.mrb[0].mxu0 }
  0xef   : > { %v370_v16 = vadd.f32 %v369_v15, %v279_v14  ;;  %v371_v17 = vpop.f32.mrb[1].mxu0 }
  0xf0   : > { %v372_v19 = vadd.f32 %v371_v17, %v279_v14  ;;  %v373_v20 = vpop.f32.mrb[2].mxu0 }
  0xf1   : > { %v374_v21 = vadd.f32 %v373_v20, %v284_v18  ;;  %v375_v22 = vpop.f32.mrb[3].mxu0  ;;  %v388_v25 = vmax.f32 %v370_v16, 0.0 }
  0xf2   : > { %v376_v24 = vadd.f32 %v375_v22, %v284_v18  ;;  %v389_v27 = vmax.f32 %v372_v19, 0.0 }
  0xf3   : > { %v390_v26 = vmax.f32 %v374_v21, 0.0 }
  0xf4   : > { %v391_v28 = vmax.f32 %v376_v24, 0.0 }
  0xf5   : > { %v396_v29 = vpack.c.bf16 %v390_v26, %v388_v25 }
  0xf6   : > { %v379_v30 = vpop.f32.mrb[4].mxu0  ;;  %v397_v31 = vpack.c.bf16 %v391_v28, %v389_v27 }
  0xf7   : > { %v380_v32 = vadd.f32 %v379_v30, %v289_v23  ;;  %v381_v33 = vpop.f32.mrb[5].mxu0 }
  0xf8   : > { %v382_v35 = vadd.f32 %v381_v33, %v289_v23  ;;  %v383_v36 = vpop.f32.mrb[6].mxu0  ;;  %411 = vmatprep.subr.bf16.mxu1 %v397_v31 }
  0xf9   : > { %v384_v37 = vadd.f32 %v383_v36, %v294_v34  ;;  %v385_v38 = vpop.f32.mrb[7].mxu0  ;;  %412 = vmatpush1.bf16.msra.mxu1 %v396_v29  ;;  %v392_v40 = vmax.f32 %v380_v32, 0.0 }
  0xfa   : > { %v386_v39 = vadd.f32 %v385_v38, %v294_v34  ;;  %v393_v42 = vmax.f32 %v382_v35, 0.0 }
  0xfb   : > { %v394_v41 = vmax.f32 %v384_v37, 0.0 }
  0xfc   : > { %v395_v43 = vmax.f32 %v386_v39, 0.0 }
  0xfd   : > { %v398_v44 = vpack.c.bf16 %v394_v41, %v392_v40 }
  0xfe   : > { %v399_v45 = vpack.c.bf16 %v395_v43, %v393_v42 }
 0x100   : > { %413 = vmatprep.subr.bf16.mxu1 %v399_v45 }
 0x101   : > { %414 = vmatpush1.bf16.msra.mxu1 %v398_v44 }
 0x104   : > { %570 = vmatmul.mubr.msk.bf16.vlgmr.msra.gmra.mrb[0].mxu1 %vm407_vm2, %v400_v46 }
 0x1d7   : > { %v445_v48 = vpop.f32.mrb[0].mxu1 }
 0x1d8   : > { %v446_v49 = vadd.f32 %v445_v48, %v405_v47  ;;  %v447_v50 = vpop.f32.mrb[1].mxu1 }
 0x1d9   : > { %v448_v51 = vadd.f32 %v447_v50, %v405_v47  ;;  %v449_v52 = vpop.f32.mrb[2].mxu1 }
 0x1da   : > { %v450_v53 = vpop.f32.mrb[3].mxu1 }
 0x1db   : > { %v571_v54 = vpack.c.bf16 %v448_v51, %v446_v49 }
 0x1dd   : > { %572 = vst.sshfl [vmem:[%s262_s24] sm:$0x33 pattern:$0x76325410] %v571_v54 }
 0x1de PF: > { %s15_s20 = sadd.s32 1, %s633_s20   ;;  %s733_s18 = smov %s629_s19 }
 0x1df   : > { %p12_p5 = scmp.ge.s32.totalorder %s15_s20, 4   ;;  %s734_s19 = smov %s736_s21 }
 0x1e1   :  { %14 = sbr.rel (!%p12_p5) target bundleno = 2 (0x2), region = 70 }

// kernel: ms_deeplab_forward.3
= control target key start
LH: loop header
LB: loop body
LE: loop exit
PB: predicated region body
PF: predicated region fallthrough
CT: control target
= control target key end

     0   :  { %8 = vsyncpa [#allocation3], 0  ;;  %s2685_s0 = inlined_call_operand.vmem [shape: bf16[8,4,8,8], index: 0, kind: input, shape index: {}]   ;;  %s2686_s1 = inlined_call_operand.vmem [shape: bf16[8,16], index: 1, kind: input, shape index: {}, may-alias: {1,2}]   ;;  %s2687_s2 = inlined_call_operand.vmem [shape: bf16[8,16], index: 2, kind: input, shape index: {}, may-alias: {1,2}]   ;;  %s2688_s3 = inlined_call_operand.hbm [shape: f32[8,8,16,16], index: 3, kind: output, shape index: {}]  }
   0x1   :  { %10 = vsyncpa [#allocation3 + $0x1], 0  ;;  %s2381_s12 = smov 0   ;;  %s2383_s13 = smov 0  }
   0x2   :  { %s2385_s14 = smov 0   ;;  %s2387_s15 = smov 0  }
   0x3 LB: > { %s2402_s16 = sadd.s32 4294967295, %s2356_s15   ;;  %s1881_s17 = sadd.s32 4294967294, %s2356_s15   ;;  %s2356_s15 = sphi %s2387_s15, %s2694_s15   ;;  %s2352_s14 = sphi %s2385_s14, %s2693_s14   ;;  %s2348_s13 = sphi %s2383_s13, %s2692_s13   ;;  %s2344_s12 = sphi %s2381_s12, %s2691_s12  }
   0x4   : > { %s2406_s18 = sadd.s32 1, %s2356_s15   ;;  %s91_s19 = sadd.s32 1, %s2352_s14 }
   0x5   : > { %s88_s20 = ssub.s32 %s2356_s15, %s2406_s18  ;;  %p101_p0 = scmp.ne.s32.totalorder %s2352_s14, %s2348_s13 }
   0x6   : > { %p89_p1 = scmp.eq.s32.totalorder %s88_s20, 0  ;;  %p102_p2 = scmp.eq.s32.totalorder %s2402_s16, 1 }
   0x7   : > { %p107_p3 = scmp.ne.s32.totalorder %s2348_s13, %s2344_s12  ;;  %p108_p4 = scmp.eq.s32.totalorder %s1881_s17, 1 }
   0x8   : > { %s2417_s21 = scalar_select %p89_p1, %s2352_s14, %s91_s19  }
   0x9   : > { %p2419_p5 = por %p102_p2, %p101_p0  ;;  %p2423_p6 = por %p108_p4, %p107_p3 }
   0xa   : > { %p1884_p7 = scmp.ge.s32.totalorder %s2356_s15, 1  ;;  %p142_p8 = scmp.lt.s32.totalorder %s2356_s15, 3 }
   0xc   : > { %p143_p9 = pnand %p1884_p7, %p142_p8 }
   0xd   : > { %s1886_s24 = sshll.u32 (!%p143_p9), %s2402_s16, 2  ;;  %v728_v27 = vld [vmem:[%s2686_s1] sm:$0xf] (!%p143_p9)  ;;  %vm754_vm0 = vcmask (!%p143_p9), 1043456   ;;  %vm729_vm1 = vcmask (!%p143_p9), 64512   ;;  %s164_s6 = sand.u32 (!%p143_p9), 1, %s2348_s13  }
   0xe   : > { %146 = sbr.rel (%p143_p9) target bundleno = 805 (0x325), region = 32  ;;  %p168_p10 = scmp.lt.s32.totalorder (!%p143_p9), %s1886_s24, 7  ;;  %2097 = vmatprep.subr.msk.bf16.mxu0 (!%p143_p9), %vm754_vm0, %v728_v27  ;;  %v756_v31 = vsel (!%p143_p9), %vm754_vm0, %v728_v27, 0  ;;  %vm1612_vm2 = vcmask (!%p143_p9), 130048  }
   0xf   : > { %2044 = vmatpush3.bf16.msra.mxu0 (!%p143_p9), %v756_v31  ;;  %s1885_s7 = sshll.u32 (!%p143_p9), %s164_s6, 9  ;;  %s1977_s9 = sshll.u32 (!%p143_p9), %s2402_s16, 13 }
  0x10   : > { %s2471_s8 = scalar_lea.vmem (!%p143_p9), [#allocation2], %s1885_s7  ;;  %s2628_s17 = scalar_lea.hbm (!%p143_p9), %s2688_s3, %s1977_s9 }
  0x11   : > { %s1819_s10 = sshll.u32 (!%p143_p9), %s2471_s8, 4  ;;  %s2644_s19 = scalar_lea.sflag (!%p143_p9), [#allocation3], %s164_s6  ;;  %s2630_s10 = int_to_ptr.vmem [resolvable:$true] %s1819_s10 }
  0x12   : > { %s2294_s20 = scalar_lea.vmem (!%p143_p9), %s2630_s10, 8192 }
  0x13   : > { %p2295_p11 = scmp.ne.s32.totalorder (!%p143_p9), %s2630_s10, %s2294_s20 }
  0x15   : > { %s2696_s24 = smov (!%p168_p10, %s1886_s24), 7  ;;  %p2296_p12 = pnand %p2295_p11, %p2419_p5 }
  0x16   : > { %s1975_s25 = sshll.u32 %s2696_s24, 4  ;;  %s2358_s24 = smov [#allocation2]  }
  0x17   : > { %s172_s28 = scalar_lea.vmem %s2685_s0, %s1975_s25  ;;  %p2297_p13 = pneg %p2296_p12 }
  0x18   : > { %v1979_v0 = vld [vmem:[%s172_s28] sm:$0xff]   ;;  %v2010_v1 = vld [vmem:[%s172_s28 + $0x8] sm:$0xff]   ;;  %v2011_v2 = vld [vmem:[%s172_s28 + $0x10] sm:$0xff]   ;;  %s2298_s25 = sshll.u32 %s2358_s24, 4  ;;  %s2299_s25 = int_to_ptr.vmem [resolvable:$false] %s2298_s25 }
  0x19   : > { %v1980_v3 = vunpack.c.l.bf16 %v1979_v0  ;;  %v1981_v4 = vunpack.c.h.bf16 %v1979_v0  ;;  %v1984_v5 = vunpack.c.l.bf16 %v2010_v1  ;;  %v1985_v6 = vunpack.c.h.bf16 %v2010_v1  ;;  %v2012_v7 = vld [vmem:[%s172_s28 + $0x18] sm:$0xff]   ;;  %v2013_v12 = vld [vmem:[%s172_s28 + $0x20] sm:$0xff]   ;;  %v2014_v14 = vld [vmem:[%s172_s28 + $0x28] sm:$0xff]   ;;  %s2300_s26 = scalar_lea.vmem %s2299_s25, 16384  ;;  %p2301_p0 = scmp.lt.s32.totalorder %s2630_s10, %s2299_s25 }
  0x1a   : > { %v1988_v8 = vunpack.c.l.bf16 %v2011_v2  ;;  %v1989_v9 = vunpack.c.h.bf16 %v2011_v2  ;;  %v1992_v10 = vunpack.c.l.bf16 %v2012_v7  ;;  %v1993_v11 = vunpack.c.h.bf16 %v2012_v7  ;;  %v2015_v22 = vld [vmem:[%s172_s28 + $0x30] sm:$0xff]   ;;  %v2016_v23 = vld [vmem:[%s172_s28 + $0x38] sm:$0xff]   ;;  %p2302_p1 = scmp.lt.s32.totalorder %s2300_s26, %s2294_s20 }
  0x1b   : > { %v2142_v13 = vpack.i.bf16 %v1981_v4, %v1980_v3  ;;  %v2149_v16 = vpack.i.bf16 %v1985_v6, %v1984_v5  ;;  %v1996_v17 = vunpack.c.l.bf16 %v2013_v12  ;;  %v1997_v18 = vunpack.c.h.bf16 %v2013_v12 }
  0x1c   : > { %v2156_v15 = vpack.i.bf16 %v1989_v9, %v1988_v8  ;;  %v2163_v19 = vpack.i.bf16 %v1993_v11, %v1992_v10  ;;  %v2000_v20 = vunpack.c.l.bf16 %v2014_v14  ;;  %v2001_v21 = vunpack.c.h.bf16 %v2014_v14  ;;  %p2303_p2 = por %p2302_p1, %p2301_p0 }
  0x1d   : > { %2143 = vxpose.xlu0.b32.start.end [1/1] (short) (narrow) %v2142_v13, 8  ;;  %v2170_v24 = vpack.i.bf16 %v1997_v18, %v1996_v17  ;;  %v2004_v25 = vunpack.c.l.bf16 %v2015_v22  ;;  %v2005_v26 = vunpack.c.h.bf16 %v2015_v22  ;;  %v2008_v29 = vunpack.c.l.bf16 %v2016_v23  ;;  %v1383_v17 = vld [vmem:[%s2687_s2] sm:$0xf] }
  0x1e   : > { %2157 = vxpose.xlu1.b32.start.end [1/1] (short) (narrow) %v2156_v15, 8  ;;  %v2177_v28 = vpack.i.bf16 %v2001_v21, %v2000_v20  ;;  %v2009_v30 = vunpack.c.h.bf16 %v2016_v23  ;;  %2099 = vmatprep.subr.msk.bf16.mxu1 %vm754_vm0, %v1383_v17  ;;  %p2304_p3 = pnand %p2303_p2, %p2297_p13 }
  0x1f   : > { %v2184_v32 = vpack.i.bf16 %v2005_v26, %v2004_v25  ;;  %2098 = vmatprep.subr.msk.bf16.mxu0 %vm754_vm0, %v1383_v17 }
  0x20   : > { %v2191_v33 = vpack.i.bf16 %v2009_v30, %v2008_v29 }
  0x21   : > { %2150 = vxpose.xlu0.b32.start.end [1/1] (short) (narrow) %v2149_v16, 8 }
  0x22   : > { %2164 = vxpose.xlu1.b32.start.end [1/1] (short) (narrow) %v2163_v19, 8  ;;  %v1433_v19 = vsel %vm754_vm0, %v1383_v17, 0 }
  0x23   : > { %2096 = vmatpush3.bf16.msra.mxu1 %v1433_v19 }
  0x25   : > { %2171 = vxpose.xlu0.b32.start.end [1/1] (short) (narrow) %v2170_v24, 8 }
  0x26   : > { %2178 = vxpose.xlu1.b32.start.end [1/1] (short) (narrow) %v2177_v28, 8 }
  0x29   : > { %2185 = vxpose.xlu0.b32.start.end [1/1] (short) (narrow) %v2184_v32, 8 }
  0x2a   : > { %2192 = vxpose.xlu1.b32.start.end [1/1] (short) (narrow) %v2191_v33, 8 }
  0x9d   : > { %v2144_v34 = vpop.trf.xlu0 }
  0x9e   : > { %v2148_v35 = vunpack.i.h.bf16 %v2144_v34  ;;  %v2145_v36 = vunpack.i.l.bf16 %v2144_v34  ;;  %v2158_v37 = vpop.trf.xlu1 }
  0x9f   : > { %v2162_v38 = vunpack.i.h.bf16 %v2158_v37  ;;  %v2159_v39 = vunpack.i.l.bf16 %v2158_v37 }
  0xa0   : > { %v720_v40 = vpack.c.bf16 %v2148_v35, %v2145_v36 }
  0xa1   : > { %v2151_v41 = vpop.trf.xlu0  ;;  %v722_v45 = vpack.c.bf16 %v2162_v38, %v2159_v39 }
  0xa2   : > { %v2155_v42 = vunpack.i.h.bf16 %v2151_v41  ;;  %v2152_v43 = vunpack.i.l.bf16 %v2151_v41  ;;  %2045 = vmatprep.mubr.msk.bf16.mxu0 %vm729_vm1, %v720_v40  ;;  %v2165_v44 = vpop.trf.xlu1 }
  0xa3   : > { %v2169_v48 = vunpack.i.h.bf16 %v2165_v44  ;;  %v2166_v49 = vunpack.i.l.bf16 %v2165_v44 }
  0xa4   : > { %v721_v46 = vpack.c.bf16 %v2155_v42, %v2152_v43 }
  0xa5   : > { %v2172_v47 = vpop.trf.xlu0  ;;  %v723_v54 = vpack.c.bf16 %v2169_v48, %v2166_v49 }
  0xa6   : > { %2046 = vmatmul.mubr.msk.bf16.vlgmr.msra.gmra.mrb[0].mxu0 %vm729_vm1, %v721_v46  ;;  %v2179_v50 = vpop.trf.xlu1  ;;  %v2176_v51 = vunpack.i.h.bf16 %v2172_v47  ;;  %v2173_v52 = vunpack.i.l.bf16 %v2172_v47 }
  0xa7   : > { %2049 = vmatprep.mubr.msk.bf16.mxu0 %vm729_vm1, %v722_v45  ;;  %v2183_v57 = vunpack.i.h.bf16 %v2179_v50  ;;  %v2180_v58 = vunpack.i.l.bf16 %v2179_v50  ;;  %2062 = vmatpush3.bf16.msra.mxu0 %v1433_v19 }
  0xa8   : > { %v724_v56 = vpack.c.bf16 %v2176_v51, %v2173_v52 }
  0xa9   : > { %v2186_v53 = vpop.trf.xlu0  ;;  %v725_v61 = vpack.c.bf16 %v2183_v57, %v2180_v58 }
  0xaa   : > { %v2193_v55 = vpop.trf.xlu1  ;;  %v2190_v59 = vunpack.i.h.bf16 %v2186_v53  ;;  %v2187_v60 = vunpack.i.l.bf16 %v2186_v53 }
  0xab   : > { %v2197_v63 = vunpack.i.h.bf16 %v2193_v55  ;;  %v2194_v0 = vunpack.i.l.bf16 %v2193_v55 }
  0xac   : > { %v726_v62 = vpack.c.bf16 %v2190_v59, %v2187_v60 }
  0xad   : > { %v727_v1 = vpack.c.bf16 %v2197_v63, %v2194_v0 }
  0xae   : > { %2050 = vmatmul.mubr.msk.bf16.gmra.mrb[4].mxu0 %vm729_vm1, %v723_v54 }
  0xaf   : > { %2053 = vmatprep.mubr.msk.bf16.mxu0 %vm729_vm1, %v724_v56 }
  0xb6   : > { %2054 = vmatmul.mubr.msk.bf16.gmra.mrb[8].mxu0 %vm729_vm1, %v725_v61 }
  0xb7   : > { %2057 = vmatprep.mubr.msk.bf16.mxu0 %vm729_vm1, %v726_v62 }
  0xbe   : > { %2058 = vmatmul.mubr.msk.bf16.gmra.mrb[12].mxu0 %vm729_vm1, %v727_v1 }
 0x179   : > { %v2047_v2 = vpop.f32.mrb[0].mxu0 }
 0x17a   : > { %v792_v3 = vpop.f32.mrb[1].mxu0 }
 0x17b   : > { %v2048_v4 = vpop.f32.mrb[2].mxu0 }
 0x17c   : > { %v795_v5 = vpop.f32.mrb[3].mxu0 }
 0x181   : > { %v2051_v6 = vpop.f32.mrb[4].mxu0 }
 0x182   : > { %v808_v7 = vpop.f32.mrb[5].mxu0 }
 0x183   : > { %v2052_v8 = vpop.f32.mrb[6].mxu0 }
 0x184   : > { %v2210_v9 = vpack.i.bf16 %v2052_v8, %v2051_v6  ;;  %v811_v10 = vpop.f32.mrb[7].mxu0 }
 0x185   : > { %v2198_v11 = vpack.i.bf16 %v811_v10, %v808_v7 }
 0x186   : > { %2211 = vxpose.xlu1.b32.start.end [1/1] (short) (narrow) %v2210_v9, 16 }
 0x187   : > { %2199 = vxpose.xlu0.b32.start.end [1/1] (short) (narrow) %v2198_v11, 16 }
 0x189   : > { %v2055_v12 = vpop.f32.mrb[8].mxu0 }
 0x18a   : > { %v824_v13 = vpop.f32.mrb[9].mxu0 }
 0x18b   : > { %v2056_v14 = vpop.f32.mrb[10].mxu0 }
 0x18c   : > { %v2234_v15 = vpack.i.bf16 %v2056_v14, %v2055_v12  ;;  %v827_v16 = vpop.f32.mrb[11].mxu0 }
 0x18d   : > { %v2222_v18 = vpack.i.bf16 %v827_v16, %v824_v13 }
 0x18e   : > { %2235 = vxpose.xlu1.b32.start.end [1/1] (short) (narrow) %v2234_v15, 16 }
 0x18f   : > { %2223 = vxpose.xlu0.b32.start.end [1/1] (short) (narrow) %v2222_v18, 16 }
 0x191   : > { %v2059_v20 = vpop.f32.mrb[12].mxu0 }
 0x192   : > { %v2270_v21 = vpack.i.bf16 %v2059_v20, %v2047_v2  ;;  %v840_v22 = vpop.f32.mrb[13].mxu0 }
 0x193   : > { %v2246_v23 = vpack.i.bf16 %v840_v22, %v792_v3  ;;  %v2060_v24 = vpop.f32.mrb[14].mxu0 }
 0x194   : > { %v2282_v25 = vpack.i.bf16 %v2060_v24, %v2048_v4  ;;  %v843_v26 = vpop.f32.mrb[15].mxu0 }
 0x195   : > { %v2258_v27 = vpack.i.bf16 %v843_v26, %v795_v5  ;;  %2247 = vxpose.xlu0.b32.start.end [1/1] (short) (narrow) %v2246_v23, 16 }
 0x197   : > { %2259 = vxpose.xlu1.b32.start.end [1/1] (short) (narrow) %v2258_v27, 16 }
 0x19a   : > { %2271 = vxpose.xlu0.b32.start.end [1/1] (short) (narrow) %v2270_v21, 16 }
 0x19c   : > { %2283 = vxpose.xlu1.b32.start.end [1/1] (short) (narrow) %v2282_v25, 16 }
 0x206   : > { %v2212_v28 = vpop.trf.xlu1 }
 0x207   : > { %v2200_v29 = vpop.trf.xlu0  ;;  %v2213_v31 = vunpack.i.l.bf16 %v2212_v28  ;;  %v2216_v45 = vunpack.i.h.bf16 %v2212_v28 }
 0x208   : > { %v2204_v30 = vunpack.i.h.bf16 %v2200_v29  ;;  %v2201_v35 = vunpack.i.l.bf16 %v2200_v29 }
 0x20a   : > { %v2217_v32 = vpop.trf.xlu1 }
 0x20b   : > { %v2205_v33 = vpop.trf.xlu0  ;;  %v2218_v34 = vunpack.i.l.bf16 %v2217_v32  ;;  %v2221_v46 = vunpack.i.h.bf16 %v2217_v32 }
 0x20c   : > { %v2209_v36 = vunpack.i.h.bf16 %v2205_v33  ;;  %v2206_v37 = vunpack.i.l.bf16 %v2205_v33 }
 0x20d   : > { %v1373_v41 = vpack.c.bf16 %v2218_v34, %v2213_v31  ;;  %v1374_v51 = vpack.c.bf16 %v2221_v46, %v2216_v45 }
 0x20e   : > { %v1371_v38 = vpack.c.bf16 %v2206_v37, %v2201_v35  ;;  %v1372_v39 = vpack.c.bf16 %v2209_v36, %v2204_v30  ;;  %v2236_v40 = vpop.trf.xlu1 }
 0x20f   : > { %v2224_v42 = vpop.trf.xlu0  ;;  %v2237_v53 = vunpack.i.l.bf16 %v2236_v40  ;;  %v2240_v8 = vunpack.i.h.bf16 %v2236_v40 }
 0x210   : > { %2071 = vmatprep.mubr.msk.bf16.mxu1 %vm729_vm1, %v1371_v38  ;;  %v2225_v43 = vunpack.i.l.bf16 %v2224_v42  ;;  %v2228_v56 = vunpack.i.h.bf16 %v2224_v42 }
 0x211   : > { %2072 = vmatmul.mubr.msk.bf16.vlgmr.msra.gmra.mrb[0].mxu1 %vm729_vm1, %v1372_v39 }
 0x212   : > { %2075 = vmatprep.mubr.msk.bf16.mxu1 %vm729_vm1, %v1373_v41  ;;  %v2241_v44 = vpop.trf.xlu1 }
 0x213   : > { %v2229_v47 = vpop.trf.xlu0  ;;  %v2242_v54 = vunpack.i.l.bf16 %v2241_v44  ;;  %v2245_v9 = vunpack.i.h.bf16 %v2241_v44 }
 0x214   : > { %v2230_v48 = vunpack.i.l.bf16 %v2229_v47  ;;  %v2233_v57 = vunpack.i.h.bf16 %v2229_v47 }
 0x215   : > { %v1377_v0 = vpack.c.bf16 %v2242_v54, %v2237_v53  ;;  %v1378_v18 = vpack.c.bf16 %v2245_v9, %v2240_v8 }
 0x216   : > { %v1375_v49 = vpack.c.bf16 %v2230_v48, %v2225_v43  ;;  %v1376_v3 = vpack.c.bf16 %v2233_v57, %v2228_v56 }
 0x217   : > { %v2248_v50 = vpop.trf.xlu0  ;;  %v2260_v52 = vpop.trf.xlu1 }
 0x218   : > { %v2249_v55 = vunpack.i.l.bf16 %v2248_v50  ;;  %v2261_v58 = vunpack.i.l.bf16 %v2260_v52  ;;  %v2252_v5 = vunpack.i.h.bf16 %v2248_v50  ;;  %v2264_v21 = vunpack.i.h.bf16 %v2260_v52 }
 0x219   : > { %2076 = vmatmul.mubr.msk.bf16.gmra.mrb[4].mxu1 %vm729_vm1, %v1374_v51 }
 0x21a   : > { %2079 = vmatprep.mubr.msk.bf16.mxu1 %vm729_vm1, %v1375_v49 }
 0x21b   : > { %v2253_v59 = vpop.trf.xlu0  ;;  %v2265_v60 = vpop.trf.xlu1 }
 0x21c   : > { %v2254_v61 = vunpack.i.l.bf16 %v2253_v59  ;;  %v2266_v62 = vunpack.i.l.bf16 %v2265_v60  ;;  %v2257_v6 = vunpack.i.h.bf16 %v2253_v59  ;;  %v2269_v22 = vunpack.i.h.bf16 %v2265_v60 }
 0x21e   : > { %v1367_v63 = vpack.c.bf16 %v2254_v61, %v2249_v55  ;;  %v1368_v1 = vpack.c.bf16 %v2266_v62, %v2261_v58  ;;  %v1379_v16 = vpack.c.bf16 %v2257_v6, %v2252_v5  ;;  %v1380_v24 = vpack.c.bf16 %v2269_v22, %v2264_v21 }
 0x21f   : > { %v2272_v2 = vpop.trf.xlu0  ;;  %v2284_v4 = vpop.trf.xlu1 }
 0x220   : > { %2063 = vmatprep.mubr.msk.bf16.mxu0 %vm729_vm1, %v1367_v63  ;;  %v2273_v7 = vunpack.i.l.bf16 %v2272_v2  ;;  %v2285_v10 = vunpack.i.l.bf16 %v2284_v4  ;;  %v2276_v19 = vunpack.i.h.bf16 %v2272_v2  ;;  %v2288_v25 = vunpack.i.h.bf16 %v2284_v4 }
 0x221   : > { %2080 = vmatmul.mubr.msk.bf16.gmra.mrb[8].mxu1 %vm729_vm1, %v1376_v3  ;;  %2064 = vmatmul.mubr.msk.bf16.vlgmr.msra.gmra.mrb[16].mxu0 %vm729_vm1, %v1368_v1 }
 0x222   : > { %2083 = vmatprep.mubr.msk.bf16.mxu1 %vm729_vm1, %v1377_v0 }
 0x223   : > { %v2277_v11 = vpop.trf.xlu0  ;;  %v2289_v12 = vpop.trf.xlu1 }
 0x224   : > { %v2278_v13 = vunpack.i.l.bf16 %v2277_v11  ;;  %v2290_v14 = vunpack.i.l.bf16 %v2289_v12  ;;  %v2281_v20 = vunpack.i.h.bf16 %v2277_v11  ;;  %v2293_v26 = vunpack.i.h.bf16 %v2289_v12 }
 0x226   : > { %v1369_v15 = vpack.c.bf16 %v2278_v13, %v2273_v7  ;;  %v1370_v17 = vpack.c.bf16 %v2290_v14, %v2285_v10  ;;  %v1381_v23 = vpack.c.bf16 %v2281_v20, %v2276_v19  ;;  %v1382_v27 = vpack.c.bf16 %v2293_v26, %v2288_v25 }
 0x228   : > { %2067 = vmatprep.mubr.msk.bf16.mxu0 %vm729_vm1, %v1369_v15 }
 0x229   : > { %2084 = vmatmul.mubr.msk.bf16.gmra.mrb[12].mxu1 %vm729_vm1, %v1378_v18  ;;  %2068 = vmatmul.mubr.msk.bf16.gmra.mrb[20].mxu0 %vm729_vm1, %v1370_v17 }
 0x22a   : > { %2087 = vmatprep.mubr.msk.bf16.mxu1 %vm729_vm1, %v1379_v16 }
 0x231   : > { %2088 = vmatmul.mubr.msk.bf16.gmra.mrb[16].mxu1 %vm729_vm1, %v1380_v24 }
 0x232   : > { %2091 = vmatprep.mubr.msk.bf16.mxu1 %vm729_vm1, %v1381_v23 }
 0x239   : > { %2092 = vmatmul.mubr.msk.bf16.gmra.mrb[20].mxu1 %vm729_vm1, %v1382_v27 }
 0x2e4   : > { %v2073_v28 = vpop.f32.mrb[0].mxu1 }
 0x2e5   : > { %v1598_v29 = vmul.f32 0.0, %v2073_v28  ;;  %v1631_v30 = vmul.f32 0.25, %v2073_v28  ;;  %v1664_v31 = vmul.f32 0.75, %v2073_v28  ;;  %v1501_v32 = vpop.f32.mrb[1].mxu1 }
 0x2e6   : > { %v1623_v33 = vmul.f32 0.75, %v1501_v32  ;;  %v1656_v34 = vmul.f32 0.25, %v1501_v32  ;;  %v2074_v35 = vpop.f32.mrb[2].mxu1 }
 0x2e7   : > { %v1606_v36 = vadd.f32 %v1598_v29, %v1501_v32  ;;  %v1599_v37 = vmul.f32 0.0, %v2074_v35  ;;  %v1632_v38 = vmul.f32 0.25, %v2074_v35  ;;  %v1665_v39 = vmul.f32 0.75, %v2074_v35  ;;  %v1504_v40 = vpop.f32.mrb[3].mxu1 }
 0x2e8   : > { %v1639_v41 = vadd.f32 %v1631_v30, %v1623_v33  ;;  %v1672_v42 = vadd.f32 %v1664_v31, %v1656_v34  ;;  %v1624_v43 = vmul.f32 0.75, %v1504_v40  ;;  %v1657_v44 = vmul.f32 0.25, %v1504_v40 }
 0x2e9   : > { %1615 = vst.msk [vmem:[%s2471_s8 + $0x80] sm:$0xff] %vm1612_vm2, %v1606_v36  ;;  %v1607_v45 = vadd.f32 %v1599_v37, %v1504_v40 }
 0x2ea   : > { %1915 = vst.msk [vmem:[%s2471_s8 + $0x90] sm:$0xff] %vm1612_vm2, %v1639_v41  ;;  %1923 = vst.msk [vmem:[%s2471_s8 + $0xa0] sm:$0xff] %vm1612_vm2, %v1672_v42  ;;  %v1640_v46 = vadd.f32 %v1632_v38, %v1624_v43  ;;  %v1673_v47 = vadd.f32 %v1665_v39, %v1657_v44 }
 0x2eb   : > { %1616 = vst.msk [vmem:[%s2471_s8 + $0x88] sm:$0xff] %vm1612_vm2, %v1607_v45 }
 0x2ec   : > { %1916 = vst.msk [vmem:[%s2471_s8 + $0x98] sm:$0xff] %vm1612_vm2, %v1640_v46  ;;  %1924 = vst.msk [vmem:[%s2471_s8 + $0xa8] sm:$0xff] %vm1612_vm2, %v1673_v47  ;;  %v2077_v48 = vpop.f32.mrb[4].mxu1 }
 0x2ed   : > { %v1739_v49 = vmul.f32 0.25, %v2077_v48  ;;  %v1764_v50 = vmul.f32 0.75, %v2077_v48  ;;  %v1517_v51 = vpop.f32.mrb[5].mxu1 }
 0x2ee   : > { %v1689_v52 = vmul.f32 0.25, %v1517_v51  ;;  %v1714_v53 = vmul.f32 0.75, %v1517_v51  ;;  %v2078_v54 = vpop.f32.mrb[6].mxu1 }
 0x2ef   : > { %v1789_v55 = vadd.f32 %v1764_v50, %v1739_v49  ;;  %v1740_v56 = vmul.f32 0.25, %v2078_v54  ;;  %v1765_v57 = vmul.f32 0.75, %v2078_v54  ;;  %v1520_v58 = vpop.f32.mrb[7].mxu1 }
 0x2f0   : > { %v1697_v59 = vadd.f32 %v1689_v52, %v1664_v31  ;;  %v1722_v60 = vadd.f32 %v1714_v53, %v1631_v30  ;;  %v1747_v61 = vadd.f32 %v1739_v49, %v1714_v53  ;;  %v1772_v62 = vadd.f32 %v1764_v50, %v1689_v52 }
 0x2f1   : > { %1963 = vst.msk [vmem:[%s2471_s8 + $0xf0] sm:$0xff] %vm1612_vm2, %v1789_v55  ;;  %v1790_v63 = vadd.f32 %v1765_v57, %v1740_v56  ;;  %v1690_v0 = vmul.f32 0.25, %v1520_v58  ;;  %v1715_v1 = vmul.f32 0.75, %v1520_v58 }
 0x2f2   : > { %1931 = vst.msk [vmem:[%s2471_s8 + $0xb0] sm:$0xff] %vm1612_vm2, %v1697_v59  ;;  %1939 = vst.msk [vmem:[%s2471_s8 + $0xc0] sm:$0xff] %vm1612_vm2, %v1722_v60 }
 0x2f3   : > { %1947 = vst.msk [vmem:[%s2471_s8 + $0xd0] sm:$0xff] %vm1612_vm2, %v1747_v61  ;;  %1955 = vst.msk [vmem:[%s2471_s8 + $0xe0] sm:$0xff] %vm1612_vm2, %v1772_v62  ;;  %v1698_v2 = vadd.f32 %v1690_v0, %v1665_v39  ;;  %v1723_v3 = vadd.f32 %v1715_v1, %v1632_v38  ;;  %v1748_v4 = vadd.f32 %v1740_v56, %v1715_v1 }
 0x2f4   : > { %1964 = vst.msk [vmem:[%s2471_s8 + $0xf8] sm:$0xff] %vm1612_vm2, %v1790_v63  ;;  %v1773_v5 = vadd.f32 %v1765_v57, %v1690_v0  ;;  %v2081_v6 = vpop.f32.mrb[8].mxu1  ;;  %v2065_v7 = vpop.f32.mrb[16].mxu0 }
 0x2f5   : > { %1932 = vst.msk [vmem:[%s2471_s8 + $0xb8] sm:$0xff] %vm1612_vm2, %v1698_v2  ;;  %1940 = vst.msk [vmem:[%s2471_s8 + $0xc8] sm:$0xff] %vm1612_vm2, %v1723_v3  ;;  %v1600_v8 = vmul.f32 0.0, %v2081_v6  ;;  %v2505_v9 = vmul.f32 0.25, %v2081_v6  ;;  %v2507_v10 = vmul.f32 0.75, %v2081_v6  ;;  %v1533_v11 = vpop.f32.mrb[9].mxu1 }
 0x2f6   : > { %1948 = vst.msk [vmem:[%s2471_s8 + $0xd8] sm:$0xff] %vm1612_vm2, %v1748_v4  ;;  %1956 = vst.msk [vmem:[%s2471_s8 + $0xe8] sm:$0xff] %vm1612_vm2, %v1773_v5  ;;  %v1596_v12 = vmul.f32 0.0, %v2065_v7  ;;  %v1469_v13 = vpop.f32.mrb[17].mxu0  ;;  %v1625_v14 = vmul.f32 0.75, %v1533_v11  ;;  %v1658_v15 = vmul.f32 0.25, %v1533_v11 }
 0x2f7   : > { %v2082_v16 = vpop.f32.mrb[10].mxu1  ;;  %v2509_v17 = vmul.f32 0.25, %v2065_v7  ;;  %v2511_v18 = vmul.f32 0.75, %v2065_v7  ;;  %v2066_v19 = vpop.f32.mrb[18].mxu0  ;;  %v1608_v20 = vadd.f32 %v1600_v8, %v1533_v11  ;;  %v1621_v32 = vmul.f32 0.75, %v1469_v13 }
 0x2f8   : > { %v1601_v21 = vmul.f32 0.0, %v2082_v16  ;;  %v2513_v22 = vmul.f32 0.25, %v2082_v16  ;;  %v2515_v23 = vmul.f32 0.75, %v2082_v16  ;;  %v1536_v24 = vpop.f32.mrb[11].mxu1  ;;  %v1472_v25 = vpop.f32.mrb[19].mxu0  ;;  %v1641_v26 = vadd.f32 %v2505_v9, %v1625_v14 }
 0x2f9   : > { %v1674_v27 = vadd.f32 %v2507_v10, %v1658_v15  ;;  %v1626_v28 = vmul.f32 0.75, %v1536_v24  ;;  %v1659_v29 = vmul.f32 0.25, %v1536_v24  ;;  %1617 = vst.msk [vmem:[%s2471_s8 + $0x100] sm:$0xff] %vm1612_vm2, %v1608_v20  ;;  %v1604_v31 = vadd.f32 %v1596_v12, %v1469_v13 }
 0x2fa   : > { %v1609_v30 = vadd.f32 %v1601_v21, %v1536_v24  ;;  %v1654_v33 = vmul.f32 0.25, %v1469_v13  ;;  %1917 = vst.msk [vmem:[%s2471_s8 + $0x110] sm:$0xff] %vm1612_vm2, %v1641_v26  ;;  %v1597_v36 = vmul.f32 0.0, %v2066_v19  ;;  %v2527_v37 = vmul.f32 0.25, %v2066_v19 }
 0x2fb   : > { %1925 = vst.msk [vmem:[%s2471_s8 + $0x120] sm:$0xff] %vm1612_vm2, %v1674_v27  ;;  %v1642_v34 = vadd.f32 %v2513_v22, %v1626_v28  ;;  %v1675_v35 = vadd.f32 %v2515_v23, %v1659_v29  ;;  %1613 = vst.msk [vmem:[%s2471_s8] sm:$0xff] %vm1612_vm2, %v1604_v31  ;;  %v1637_v38 = vadd.f32 %v2509_v17, %v1621_v32  ;;  %v2535_v40 = vmul.f32 0.75, %v2066_v19 }
 0x2fc   : > { %1618 = vst.msk [vmem:[%s2471_s8 + $0x108] sm:$0xff] %vm1612_vm2, %v1609_v30  ;;  %v1670_v39 = vadd.f32 %v2511_v18, %v1654_v33  ;;  %v1622_v41 = vmul.f32 0.75, %v1472_v25  ;;  %v1605_v42 = vadd.f32 %v1597_v36, %v1472_v25  ;;  %v1655_v43 = vmul.f32 0.25, %v1472_v25  ;;  %v2085_v44 = vpop.f32.mrb[12].mxu1  ;;  %v2069_v45 = vpop.f32.mrb[20].mxu0 }
 0x2fd   : > { %1918 = vst.msk [vmem:[%s2471_s8 + $0x118] sm:$0xff] %vm1612_vm2, %v1642_v34  ;;  %1926 = vst.msk [vmem:[%s2471_s8 + $0x128] sm:$0xff] %vm1612_vm2, %v1675_v35  ;;  %v1741_v47 = vmul.f32 0.25, %v2085_v44  ;;  %v1766_v48 = vmul.f32 0.75, %v2085_v44  ;;  %v1737_v49 = vmul.f32 0.25, %v2069_v45  ;;  %v1549_v50 = vpop.f32.mrb[13].mxu1 }
 0x2fe   : > { %1913 = vst.msk [vmem:[%s2471_s8 + $0x10] sm:$0xff] %vm1612_vm2, %v1637_v38  ;;  %1921 = vst.msk [vmem:[%s2471_s8 + $0x20] sm:$0xff] %vm1612_vm2, %v1670_v39  ;;  %v1638_v46 = vadd.f32 %v2527_v37, %v1622_v41  ;;  %v1485_v51 = vpop.f32.mrb[21].mxu0  ;;  %v1671_v52 = vadd.f32 %v2535_v40, %v1655_v43  ;;  %v1762_v53 = vmul.f32 0.75, %v2069_v45  ;;  %v1691_v54 = vmul.f32 0.25, %v1549_v50  ;;  %v2086_v56 = vpop.f32.mrb[14].mxu1 }
 0x2ff   : > { %1614 = vst.msk [vmem:[%s2471_s8 + $0x8] sm:$0xff] %vm1612_vm2, %v1605_v42  ;;  %v1716_v55 = vmul.f32 0.75, %v1549_v50  ;;  %v2070_v57 = vpop.f32.mrb[22].mxu0  ;;  %v1791_v58 = vadd.f32 %v1766_v48, %v1741_v47  ;;  %v1687_v59 = vmul.f32 0.25, %v1485_v51  ;;  %v1712_v60 = vmul.f32 0.75, %v1485_v51  ;;  %v1552_v62 = vpop.f32.mrb[15].mxu1 }
 0x300   : > { %1914 = vst.msk [vmem:[%s2471_s8 + $0x18] sm:$0xff] %vm1612_vm2, %v1638_v46  ;;  %v1742_v61 = vmul.f32 0.25, %v2086_v56  ;;  %v1488_v63 = vpop.f32.mrb[23].mxu0  ;;  %1922 = vst.msk [vmem:[%s2471_s8 + $0x28] sm:$0xff] %vm1612_vm2, %v1671_v52  ;;  %v1787_v0 = vadd.f32 %v1762_v53, %v1737_v49  ;;  %v1699_v1 = vadd.f32 %v1691_v54, %v2507_v10  ;;  %v1774_v4 = vadd.f32 %v1766_v48, %v1691_v54 }
 0x301   : > { %v1724_v2 = vadd.f32 %v1716_v55, %v2505_v9  ;;  %v1749_v3 = vadd.f32 %v1741_v47, %v1716_v55  ;;  %1965 = vst.msk [vmem:[%s2471_s8 + $0x170] sm:$0xff] %vm1612_vm2, %v1791_v58  ;;  %v1695_v5 = vadd.f32 %v1687_v59, %v2511_v18  ;;  %v1720_v6 = vadd.f32 %v1712_v60, %v2509_v17 }
 0x302   : > { %v1745_v7 = vadd.f32 %v1737_v49, %v1712_v60  ;;  %1961 = vst.msk [vmem:[%s2471_s8 + $0x70] sm:$0xff] %vm1612_vm2, %v1787_v0  ;;  %1933 = vst.msk [vmem:[%s2471_s8 + $0x130] sm:$0xff] %vm1612_vm2, %v1699_v1  ;;  %v1770_v8 = vadd.f32 %v1762_v53, %v1687_v59  ;;  %v1767_v9 = vmul.f32 0.75, %v2086_v56  ;;  %v1738_v10 = vmul.f32 0.25, %v2070_v57 }
 0x303   : > { %1941 = vst.msk [vmem:[%s2471_s8 + $0x140] sm:$0xff] %vm1612_vm2, %v1724_v2  ;;  %1949 = vst.msk [vmem:[%s2471_s8 + $0x150] sm:$0xff] %vm1612_vm2, %v1749_v3  ;;  %v1763_v11 = vmul.f32 0.75, %v2070_v57  ;;  %v1692_v12 = vmul.f32 0.25, %v1552_v62  ;;  %v1717_v13 = vmul.f32 0.75, %v1552_v62  ;;  %v1688_v14 = vmul.f32 0.25, %v1488_v63 }
 0x304   : > { %1957 = vst.msk [vmem:[%s2471_s8 + $0x160] sm:$0xff] %vm1612_vm2, %v1774_v4  ;;  %1929 = vst.msk [vmem:[%s2471_s8 + $0x30] sm:$0xff] %vm1612_vm2, %v1695_v5  ;;  %v1713_v15 = vmul.f32 0.75, %v1488_v63  ;;  %v1792_v16 = vadd.f32 %v1767_v9, %v1742_v61  ;;  %v2089_v18 = vpop.f32.mrb[16].mxu1 }
 0x305   : > { %1937 = vst.msk [vmem:[%s2471_s8 + $0x40] sm:$0xff] %vm1612_vm2, %v1720_v6  ;;  %1945 = vst.msk [vmem:[%s2471_s8 + $0x50] sm:$0xff] %vm1612_vm2, %v1745_v7  ;;  %v1788_v17 = vadd.f32 %v1763_v11, %v1738_v10  ;;  %v1700_v19 = vadd.f32 %v1692_v12, %v2515_v23  ;;  %v1725_v20 = vadd.f32 %v1717_v13, %v2513_v22  ;;  %v1565_v25 = vpop.f32.mrb[17].mxu1  ;;  %v1602_v22 = vmul.f32 0.0, %v2089_v18 }
 0x306   : > { %1953 = vst.msk [vmem:[%s2471_s8 + $0x60] sm:$0xff] %vm1612_vm2, %v1770_v8  ;;  %v1750_v21 = vadd.f32 %v1742_v61, %v1717_v13  ;;  %v1775_v24 = vadd.f32 %v1767_v9, %v1692_v12  ;;  %1966 = vst.msk [vmem:[%s2471_s8 + $0x178] sm:$0xff] %vm1612_vm2, %v1792_v16  ;;  %v1696_v26 = vadd.f32 %v1688_v14, %v2535_v40  ;;  %v2090_v23 = vpop.f32.mrb[18].mxu1  ;;  %v1635_v30 = vmul.f32 0.25, %v2089_v18 }
 0x307   : > { %1962 = vst.msk [vmem:[%s2471_s8 + $0x78] sm:$0xff] %vm1612_vm2, %v1788_v17  ;;  %v1721_v27 = vadd.f32 %v1713_v15, %v2527_v37  ;;  %v1746_v28 = vadd.f32 %v1738_v10, %v1713_v15  ;;  %v1771_v29 = vadd.f32 %v1763_v11, %v1688_v14  ;;  %1934 = vst.msk [vmem:[%s2471_s8 + $0x138] sm:$0xff] %vm1612_vm2, %v1700_v19  ;;  %v1668_v31 = vmul.f32 0.75, %v2089_v18  ;;  %v1568_v33 = vpop.f32.mrb[19].mxu1 }
 0x308   : > { %1942 = vst.msk [vmem:[%s2471_s8 + $0x148] sm:$0xff] %vm1612_vm2, %v1725_v20  ;;  %1950 = vst.msk [vmem:[%s2471_s8 + $0x158] sm:$0xff] %vm1612_vm2, %v1750_v21  ;;  %v1627_v32 = vmul.f32 0.75, %v1565_v25  ;;  %v1660_v34 = vmul.f32 0.25, %v1565_v25  ;;  %v1603_v35 = vmul.f32 0.0, %v2090_v23  ;;  %v1636_v36 = vmul.f32 0.25, %v2090_v23 }
 0x309   : > { %1958 = vst.msk [vmem:[%s2471_s8 + $0x168] sm:$0xff] %vm1612_vm2, %v1775_v24  ;;  %1930 = vst.msk [vmem:[%s2471_s8 + $0x38] sm:$0xff] %vm1612_vm2, %v1696_v26  ;;  %v1669_v37 = vmul.f32 0.75, %v2090_v23  ;;  %v1610_v38 = vadd.f32 %v1602_v22, %v1565_v25  ;;  %v1628_v40 = vmul.f32 0.75, %v1568_v33  ;;  %v1661_v41 = vmul.f32 0.25, %v1568_v33 }
 0x30a   : > { %1938 = vst.msk [vmem:[%s2471_s8 + $0x48] sm:$0xff] %vm1612_vm2, %v1721_v27  ;;  %1946 = vst.msk [vmem:[%s2471_s8 + $0x58] sm:$0xff] %vm1612_vm2, %v1746_v28  ;;  %v1643_v39 = vadd.f32 %v1635_v30, %v1627_v32  ;;  %v1676_v42 = vadd.f32 %v1668_v31, %v1660_v34  ;;  %v1611_v43 = vadd.f32 %v1603_v35, %v1568_v33 }
 0x30b   : > { %1954 = vst.msk [vmem:[%s2471_s8 + $0x68] sm:$0xff] %vm1612_vm2, %v1771_v29  ;;  %1619 = vst.msk [vmem:[%s2471_s8 + $0x180] sm:$0xff] %vm1612_vm2, %v1610_v38  ;;  %v1644_v44 = vadd.f32 %v1636_v36, %v1628_v40  ;;  %v1677_v45 = vadd.f32 %v1669_v37, %v1661_v41 }
 0x30c   : > { %1919 = vst.msk [vmem:[%s2471_s8 + $0x190] sm:$0xff] %vm1612_vm2, %v1643_v39  ;;  %1927 = vst.msk [vmem:[%s2471_s8 + $0x1a0] sm:$0xff] %vm1612_vm2, %v1676_v42  ;;  %v2093_v46 = vpop.f32.mrb[20].mxu1 }
 0x30d   : > { %1620 = vst.msk [vmem:[%s2471_s8 + $0x188] sm:$0xff] %vm1612_vm2, %v1611_v43  ;;  %1920 = vst.msk [vmem:[%s2471_s8 + $0x198] sm:$0xff] %vm1612_vm2, %v1644_v44  ;;  %v1743_v47 = vmul.f32 0.25, %v2093_v46  ;;  %v1768_v48 = vmul.f32 0.75, %v2093_v46  ;;  %v1581_v49 = vpop.f32.mrb[21].mxu1 }
 0x30e   : > { %1928 = vst.msk [vmem:[%s2471_s8 + $0x1a8] sm:$0xff] %vm1612_vm2, %v1677_v45  ;;  %v1693_v50 = vmul.f32 0.25, %v1581_v49  ;;  %v1718_v51 = vmul.f32 0.75, %v1581_v49  ;;  %v2094_v52 = vpop.f32.mrb[22].mxu1 }
 0x30f   : > { %v1793_v53 = vadd.f32 %v1768_v48, %v1743_v47  ;;  %v1744_v54 = vmul.f32 0.25, %v2094_v52  ;;  %v1769_v55 = vmul.f32 0.75, %v2094_v52  ;;  %v1584_v56 = vpop.f32.mrb[23].mxu1 }
 0x310   : > { %v1701_v57 = vadd.f32 %v1693_v50, %v1668_v31  ;;  %v1726_v58 = vadd.f32 %v1718_v51, %v1635_v30  ;;  %v1751_v59 = vadd.f32 %v1743_v47, %v1718_v51  ;;  %v1776_v60 = vadd.f32 %v1768_v48, %v1693_v50 }
 0x311   : > { %1967 = vst.msk [vmem:[%s2471_s8 + $0x1f0] sm:$0xff] %vm1612_vm2, %v1793_v53  ;;  %v1794_v61 = vadd.f32 %v1769_v55, %v1744_v54  ;;  %v1694_v62 = vmul.f32 0.25, %v1584_v56  ;;  %v1719_v63 = vmul.f32 0.75, %v1584_v56 }
 0x312   : > { %1935 = vst.msk [vmem:[%s2471_s8 + $0x1b0] sm:$0xff] %vm1612_vm2, %v1701_v57  ;;  %1943 = vst.msk [vmem:[%s2471_s8 + $0x1c0] sm:$0xff] %vm1612_vm2, %v1726_v58 }
 0x313   : > { %1951 = vst.msk [vmem:[%s2471_s8 + $0x1d0] sm:$0xff] %vm1612_vm2, %v1751_v59  ;;  %1959 = vst.msk [vmem:[%s2471_s8 + $0x1e0] sm:$0xff] %vm1612_vm2, %v1776_v60  ;;  %v1702_v0 = vadd.f32 %v1694_v62, %v1669_v37  ;;  %v1727_v1 = vadd.f32 %v1719_v63, %v1636_v36  ;;  %v1752_v2 = vadd.f32 %v1744_v54, %v1719_v63 }
 0x314   : > { %1968 = vst.msk [vmem:[%s2471_s8 + $0x1f8] sm:$0xff] %vm1612_vm2, %v1794_v61  ;;  %v1777_v3 = vadd.f32 %v1769_v55, %v1694_v62 }
 0x315   : > { %1936 = vst.msk [vmem:[%s2471_s8 + $0x1b8] sm:$0xff] %vm1612_vm2, %v1702_v0  ;;  %1944 = vst.msk [vmem:[%s2471_s8 + $0x1c8] sm:$0xff] %vm1612_vm2, %v1727_v1 }
 0x316   : > { %1952 = vst.msk [vmem:[%s2471_s8 + $0x1d8] sm:$0xff] %vm1612_vm2, %v1752_v2  ;;  %1960 = vst.msk [vmem:[%s2471_s8 + $0x1e8] sm:$0xff] %vm1612_vm2, %v1777_v3 }
 0x317   : > { %2307 = shalt.err (!%p2304_p3)
}
 0x318   : > { %s2308_s27 = scalar_lea.hbm %s2628_s17, 8192  ;;  %s2312_s30 = scalar_lea.hbm %s2688_s3, 16384 }
 0x319   : > { %p2309_p4 = scmp.ne.s32.totalorder %s2628_s17, %s2308_s27  ;;  %p2313_p9 = scmp.lt.u32.totalorder %s2628_s17, %s2688_s3 }
 0x31a   : > { %p2314_p10 = scmp.lt.u32.totalorder %s2312_s30, %s2308_s27  ;;  %p2316_p12 = scmp.lt.u32.totalorder %s2308_s27, %s2628_s17 }
 0x31b   : > { %p2310_p7 = pnand %p2309_p4, %p2419_p5 }
 0x31c   : > { %p2315_p11 = por %p2314_p10, %p2313_p9 }
 0x31d   : > { %p2311_p8 = pneg %p2310_p7 }
 0x31e   : > { %p2317_p13 = por %p2316_p12, %p2315_p11 }
 0x320   : > { %p2318_p0 = pnand %p2317_p13, %p2311_p8 }
 0x322   : > { %2321 = shalt.err (!%p2318_p0)
}
 0x323   : > { %s2359_s6 = smov 128   ;;  %s2360_s7 = smov 8  }
 0x324   : > { %2100 = dma.vmem_to_hbm [thread:$0]  (%p2419_p5), %s2630_s10, 8192, %s2628_s17, %s2644_s19, %s2359_s6, %s2359_s6, %s2360_s7  }
 0x325 PF: > { %p2106_p1 = scmp.ge.s32.totalorder %s2356_s15, 2  ;;  %s1834_s8 = sand.u32 1, %s2344_s12  }
 0x326   : > { %s1835_s9 = scalar_lea.sflag [#allocation3], %s1834_s8 }
 0x327   : > { %p2103_p2 = pnand %p2106_p1, %p2423_p6 }
 0x329   : > { %2339 = dma.done.wait (!%p2103_p2), %s1835_s9, 8192  }
 0x32a   : > { %2341 = vsyncadd (!%p2103_p2), %s1835_s9, 4294959104  ;;  %p13_p3 = scmp.ge.s32.totalorder %s2406_s18, 4   ;;  %s2691_s12 = smov %s2348_s13 }
 0x32b   : > { %s2692_s13 = smov %s2352_s14  ;;  %s2693_s14 = smov %s2417_s21 }
 0x32c   : > { %s2694_s15 = smov %s2406_s18  ;;  %15 = sbr.rel (!%p13_p3) target bundleno = 3 (0x3), region = 74 }
 0x333   :  { %1840 = vsyncpa [#allocation3], 1 }
 0x334   :  { %1842 = vsyncpa [#allocation3 + $0x1], 1 }

</bundles_post_ra>
